<compile_context>
chip_gen: v6e
topology: v6e:2x2x1
jax: 0.10.0
libtpu: 0.0.40
codegen_flags: <defaults>
</compile_context>

<pallas_src>
import functools

import jax
import jax.numpy as jnp
import numpy as np
from jax.experimental import pallas as pl
from jax.experimental.pallas import tpu as pltpu


# ----------------------------- Pallas kernel ------------------------------- #
def _disc_kernel(
    x_ref,       # (seq_len*B, 8)   augmented input rows: [x, y, 1, 0,...]
    w_cb_ref,    # (8, 4*Hp)        rows 0-1: w_emb@w_ih; row 2: b_emb@w_ih + b_ih + b_hh
    w_hh_ref,    # (Hp, 4*Hp)       recurrent weights, gate order (i,f,o,g), zero-padded
    clf_ref,     # (Hp+24, M)       [w1 ; b1 @ row Hp ; w2^T @ row Hp+8 ; b2 @ row Hp+16]
    out_ref,     # (B, 1)
    xw_ref,      # VMEM scratch (seq_len*B, 4*Hp)
    *,
    seq_len,
    batch,
    h_pad,
):
    # Input (+bias) contribution of every timestep in ONE matmul, off the serial
    # chain; lands in VMEM scratch and is read back as per-step row slices.
    xw_ref[...] = jnp.dot(
        x_ref[...], w_cb_ref[...], preferred_element_type=jnp.float32
    )

    w_hh = w_hh_ref[...]                                   # (Hp, 4*Hp), read once

    h = jnp.zeros((batch, h_pad), jnp.float32)
    c = jnp.zeros((batch, h_pad), jnp.float32)

    # seq_len is small & static -> fully unrolled recurrence, static aligned slices.
    for t in range(seq_len):
        gates = xw_ref[t * batch:(t + 1) * batch, :] + jnp.dot(
            h, w_hh, preferred_element_type=jnp.float32
        )                                                  # (B, 4*Hp)

        # Gate order (i, f, o, g): one sigmoid slab + one tanh per step.
        sig = jax.nn.sigmoid(gates[:, 0:3 * h_pad])
        i_g = sig[:, 0 * h_pad:1 * h_pad]
        f_g = sig[:, 1 * h_pad:2 * h_pad]
        o_g = sig[:, 2 * h_pad:3 * h_pad]
        g_g = jnp.tanh(gates[:, 3 * h_pad:4 * h_pad])

        c = f_g * c + i_g * g_g
        h = o_g * jnp.tanh(c)

    # Classifier MLP on the final hidden state (padded rows of w1 are zero).
    w1 = clf_ref[0:h_pad, :]                               # (Hp, M)
    b1 = clf_ref[h_pad:h_pad + 1, :]                       # (1, M)
    w2r = clf_ref[h_pad + 8:h_pad + 9, :]                  # (1, M) == w2^T
    b2 = clf_ref[h_pad + 16:h_pad + 17, 0:1]               # (1, 1)

    z1 = jnp.tanh(
        jnp.dot(h, w1, preferred_element_type=jnp.float32) + b1
    )                                                      # (B, M)
    # (B,M)@(M,1) -> VPU multiply + lane reduction (cheaper than a degenerate MXU op).
    scores = jnp.tanh(jnp.sum(z1 * w2r, axis=-1, keepdims=True) + b2)
    out_ref[...] = scores.astype(out_ref.dtype)


# ----------------------- one-time weight preprocessing ---------------------- #
def prepare_params(params):
    """Host-side, ONE-TIME packing of the raw (transposed-PyTorch) weights."""
    w_emb = np.asarray(params["w_emb"], np.float32)        # (2, E)
    b_emb = np.asarray(params["b_emb"], np.float32)        # (1, E)
    w_ih = np.asarray(params["w_ih"], np.float32)          # (E, 4H)
    w_hh = np.asarray(params["w_hh"], np.float32)          # (H, 4H)
    b_g = np.asarray(params["b_gates"], np.float32)        # (1, 4H)  (b_ih + b_hh)
    w1 = np.asarray(params["w1"], np.float32)              # (H, M)
    b1 = np.asarray(params["b1"], np.float32)              # (1, M)
    w2 = np.asarray(params["w2"], np.float32)              # (M, 1)
    b2 = np.asarray(params["b2"], np.float32)              # (1, 1)

    h_dim = w_hh.shape[0]
    m_dim = w1.shape[1]
    h_pad = ((h_dim + 127) // 128) * 128                   # lane-aligned hidden dim

    # PyTorch gate order is (i, f, g, o); repack as (i, f, o, g) so the kernel
    # applies one sigmoid over 3*Hp contiguous lanes and one tanh over Hp.
    def pad_gates(w, perm=(0, 1, 3, 2)):
        out = np.zeros((w.shape[0], 4 * h_pad), np.float32)
        for dst, src in enumerate(perm):
            out[:, dst * h_pad:dst * h_pad + h_dim] = w[:, src * h_dim:(src + 1) * h_dim]
        return out

    # Fold the spatial embedding AND all biases into one (8, 4Hp) input projection:
    #   x_aug = [x, y, 1, 0,...]  =>  x_aug @ w_cb == (x@w_emb + b_emb)@w_ih + b_ih + b_hh
    w_cb = np.zeros((8, 4 * h_pad), np.float32)
    w_cb[0:2] = pad_gates(w_emb @ w_ih)
    w_cb[2] = pad_gates(b_emb @ w_ih + b_g)[0]

    w_hh_p = np.zeros((h_pad, 4 * h_pad), np.float32)
    w_hh_p[:h_dim] = pad_gates(w_hh)

    # Classifier packed into one sublane-aligned buffer.
    clf = np.zeros((h_pad + 24, m_dim), np.float32)
    clf[:h_dim, :] = w1
    clf[h_pad, :] = b1[0]
    clf[h_pad + 8, :] = w2[:, 0]
    clf[h_pad + 16, 0] = b2[0, 0]

    return {
        "w_cb": jnp.asarray(w_cb),
        "w_hh": jnp.asarray(w_hh_p),
        "clf": jnp.asarray(clf),
    }


# ------------------------------- wrapper ------------------------------------ #
@jax.jit
def trajectory_discriminator(traj, prep):
    """traj: (seq_len, batch, 2) f32; prep = prepare_params(...) -> scores (batch, 1)."""
    seq_len, batch, _ = traj.shape
    h_pad = prep["w_hh"].shape[0]

    # Augmented input: [x, y, 1, 0,...] so the bias rides the same matmul.
    x2 = traj.reshape(seq_len * batch, 2).astype(jnp.float32)
    x_aug = jnp.zeros((seq_len * batch, 8), jnp.float32)
    x_aug = x_aug.at[:, 0:2].set(x2).at[:, 2].set(1.0)

    kernel = functools.partial(
        _disc_kernel, seq_len=seq_len, batch=batch, h_pad=h_pad
    )
    vmem = pl.BlockSpec(memory_space=pltpu.MemorySpace.VMEM)

    return pl.pallas_call(
        kernel,
        out_shape=jax.ShapeDtypeStruct((batch, 1), jnp.float32),
        in_specs=[vmem, vmem, vmem, vmem],
        out_specs=vmem,
        scratch_shapes=[pltpu.VMEM((seq_len * batch, 4 * h_pad), jnp.float32)],
    )(x_aug, prep["w_cb"], prep["w_hh"], prep["clf"])


# --------------------------- pure-JAX reference ------------------------------ #
def reference(traj, p):
    def step(carry, x_t):
        h, c = carry
        emb = x_t @ p["w_emb"] + p["b_emb"]
        gates = emb @ p["w_ih"] + h @ p["w_hh"] + p["b_gates"]
        hd = p["w_hh"].shape[0]
        i = jax.nn.sigmoid(gates[:, 0 * hd:1 * hd])
        f = jax.nn.sigmoid(gates[:, 1 * hd:2 * hd])
        g = jnp.tanh(gates[:, 2 * hd:3 * hd])
        o = jax.nn.sigmoid(gates[:, 3 * hd:4 * hd])
        c = f * c + i * g
        h = o * jnp.tanh(c)
        return (h, c), None

    batch = traj.shape[1]
    hd = p["w_hh"].shape[0]
    h0 = jnp.zeros((batch, hd), jnp.float32)
    (h, _), _ = jax.lax.scan(step, (h0, h0), traj)
    z1 = jnp.tanh(h @ p["w1"] + p["b1"])
    return jnp.tanh(z1 @ p["w2"] + p["b2"])


# --------------------------------- main -------------------------------------- #
if __name__ == "__main__":
    SEQ, BATCH = 8, 8
    E_DIM, H_DIM, MLP_DIM = 64, 64, 64   # embedding_dim=64, h_dim=64, mlp_dim=64

    key = jax.random.PRNGKey(0)
    keys = jax.random.split(key, 12)

    def init(k, shape, fan_in):
        bound = 1.0 / np.sqrt(fan_in)
        return jax.random.uniform(k, shape, jnp.float32, -bound, bound)

    params = {
        # spatial embedding Linear(2, E): store W^T
        "w_emb": init(keys[0], (2, E_DIM), 2),
        "b_emb": init(keys[1], (1, E_DIM), 2),
        # LSTM weights, stored transposed: (E, 4H) and (H, 4H), gate order i,f,g,o
        "w_ih": init(keys[2], (E_DIM, 4 * H_DIM), H_DIM),
        "w_hh": init(keys[3], (H_DIM, 4 * H_DIM), H_DIM),
        "b_gates": init(keys[4], (1, 4 * H_DIM), H_DIM)
                   + init(keys[5], (1, 4 * H_DIM), H_DIM),   # b_ih + b_hh
        # real_classifier: Linear(H, M) -> Tanh -> Linear(M, 1) -> Tanh
        "w1": init(keys[6], (H_DIM, MLP_DIM), H_DIM),
        "b1": init(keys[7], (1, MLP_DIM), H_DIM),
        "w2": init(keys[8], (MLP_DIM, 1), MLP_DIM),
        "b2": init(keys[9], (1, 1), MLP_DIM),
    }

    traj = jax.random.normal(keys[10], (SEQ, BATCH, 2), jnp.float32)

    prep = prepare_params(params)            # one-time, host-side
    scores = trajectory_discriminator(traj, prep)
    scores = jax.block_until_ready(scores)

    ref = reference(traj, params)
    np.testing.assert_allclose(np.asarray(scores), np.asarray(ref),
                               rtol=1e-4, atol=1e-5)

    print("KERNEL_OK")
</pallas_src>

<mosaic_0001>
module attributes {stable_mosaic.version = 11 : i64} {
  func.func @_disc_kernel(%arg0: memref<64x8xf32, #tpu.memory_space<vmem>>, %arg1: memref<8x512xf32, #tpu.memory_space<vmem>>, %arg2: memref<128x512xf32, #tpu.memory_space<vmem>>, %arg3: memref<152x64xf32, #tpu.memory_space<vmem>>, %arg4: memref<8x1xf32, #tpu.memory_space<vmem>>, %arg5: memref<64x512xf32, #tpu.memory_space<vmem>>) attributes {dimension_semantics = [], scalar_prefetch = 0 : i64, scratch_operands = 1 : i64, tpu.core_type = #tpu.core_type<tc>} {
    %c0 = arith.constant 0 : index
    %c0_0 = arith.constant 0 : index
    %0 = vector.load %arg0[%c0, %c0_0] : memref<64x8xf32, #tpu.memory_space<vmem>>, vector<64x8xf32>
    %c0_1 = arith.constant 0 : index
    %c0_2 = arith.constant 0 : index
    %1 = vector.load %arg1[%c0_1, %c0_2] : memref<8x512xf32, #tpu.memory_space<vmem>>, vector<8x512xf32>
    %cst = arith.constant dense<0.000000e+00> : vector<64x512xf32>
    %2 = tpu.matmul %0, %1, %cst {dimension_numbers = #tpu.dot_dimension_numbers<[1], [0], [0], [1], [0, 0, 1, 1], [], []>} : vector<64x8xf32>, vector<8x512xf32>, vector<64x512xf32> -> vector<64x512xf32>
    %c0_3 = arith.constant 0 : index
    %c0_4 = arith.constant 0 : index
    %3 = vector.load %arg5[%c0_3, %c0_4] : memref<64x512xf32, #tpu.memory_space<vmem>>, vector<64x512xf32>
    tpu.vector_store %arg5[%c0_3, %c0_4], %2 {strides = array<i32>} : memref<64x512xf32, #tpu.memory_space<vmem>>, vector<64x512xf32>,
    %c0_5 = arith.constant 0 : index
    %c0_6 = arith.constant 0 : index
    %4 = vector.load %arg2[%c0_5, %c0_6] : memref<128x512xf32, #tpu.memory_space<vmem>>, vector<128x512xf32>
    %cst_7 = arith.constant 0.000000e+00 : f32
    %5 = vector.broadcast %cst_7 : f32 to vector<8x128xf32>
    %cst_8 = arith.constant 0.000000e+00 : f32
    %6 = vector.broadcast %cst_8 : f32 to vector<8x128xf32>
    %c0_9 = arith.constant 0 : index
    %c0_10 = arith.constant 0 : index
    %7 = vector.load %arg5[%c0_9, %c0_10] : memref<64x512xf32, #tpu.memory_space<vmem>>, vector<8x512xf32>
    %cst_11 = arith.constant dense<0.000000e+00> : vector<8x512xf32>
    %8 = tpu.matmul %5, %4, %cst_11 {dimension_numbers = #tpu.dot_dimension_numbers<[1], [0], [0], [1], [0, 0, 1, 1], [], []>} : vector<8x128xf32>, vector<128x512xf32>, vector<8x512xf32> -> vector<8x512xf32>
    %9 = arith.addf %7, %8 : vector<8x512xf32>
    %10 = vector.extract_strided_slice %9 {offsets = [0, 0], sizes = [8, 384], strides = [1, 1]} : vector<8x512xf32> to vector<8x384xf32>
    %11 = arith.negf %10 : vector<8x384xf32>
    %12 = math.exp %11 : vector<8x384xf32>
    %cst_12 = arith.constant 1.000000e+00 : f32
    %13 = vector.broadcast %cst_12 : f32 to vector<8x384xf32>
    %14 = arith.addf %13, %12 : vector<8x384xf32>
    %15 = arith.divf %13, %14 : vector<8x384xf32>
    %16 = vector.extract_strided_slice %15 {offsets = [0, 0], sizes = [8, 128], strides = [1, 1]} : vector<8x384xf32> to vector<8x128xf32>
    %17 = vector.extract_strided_slice %15 {offsets = [0, 128], sizes = [8, 128], strides = [1, 1]} : vector<8x384xf32> to vector<8x128xf32>
    %18 = vector.extract_strided_slice %15 {offsets = [0, 256], sizes = [8, 128], strides = [1, 1]} : vector<8x384xf32> to vector<8x128xf32>
    %19 = vector.extract_strided_slice %9 {offsets = [0, 384], sizes = [8, 128], strides = [1, 1]} : vector<8x512xf32> to vector<8x128xf32>
    %20 = math.tanh %19 : vector<8x128xf32>
    %21 = arith.mulf %17, %6 : vector<8x128xf32>
    %22 = arith.mulf %16, %20 : vector<8x128xf32>
    %23 = arith.addf %21, %22 : vector<8x128xf32>
    %24 = math.tanh %23 : vector<8x128xf32>
    %25 = arith.mulf %18, %24 : vector<8x128xf32>
    %c8 = arith.constant 8 : index
    %c0_13 = arith.constant 0 : index
    %26 = vector.load %arg5[%c8, %c0_13] : memref<64x512xf32, #tpu.memory_space<vmem>>, vector<8x512xf32>
    %cst_14 = arith.constant dense<0.000000e+00> : vector<8x512xf32>
    %27 = tpu.matmul %25, %4, %cst_14 {dimension_numbers = #tpu.dot_dimension_numbers<[1], [0], [0], [1], [0, 0, 1, 1], [], []>} : vector<8x128xf32>, vector<128x512xf32>, vector<8x512xf32> -> vector<8x512xf32>
    %28 = arith.addf %26, %27 : vector<8x512xf32>
    %29 = vector.extract_strided_slice %28 {offsets = [0, 0], sizes = [8, 384], strides = [1, 1]} : vector<8x512xf32> to vector<8x384xf32>
    %30 = arith.negf %29 : vector<8x384xf32>
    %31 = math.exp %30 : vector<8x384xf32>
    %cst_15 = arith.constant 1.000000e+00 : f32
    %32 = vector.broadcast %cst_15 : f32 to vector<8x384xf32>
    %33 = arith.addf %32, %31 : vector<8x384xf32>
    %34 = arith.divf %32, %33 : vector<8x384xf32>
    %35 = vector.extract_strided_slice %34 {offsets = [0, 0], sizes = [8, 128], strides = [1, 1]} : vector<8x384xf32> to vector<8x128xf32>
    %36 = vector.extract_strided_slice %34 {offsets = [0, 128], sizes = [8, 128], strides = [1, 1]} : vector<8x384xf32> to vector<8x128xf32>
    %37 = vector.extract_strided_slice %34 {offsets = [0, 256], sizes = [8, 128], strides = [1, 1]} : vector<8x384xf32> to vector<8x128xf32>
    %38 = vector.extract_strided_slice %28 {offsets = [0, 384], sizes = [8, 128], strides = [1, 1]} : vector<8x512xf32> to vector<8x128xf32>
    %39 = math.tanh %38 : vector<8x128xf32>
    %40 = arith.mulf %36, %23 : vector<8x128xf32>
    %41 = arith.mulf %35, %39 : vector<8x128xf32>
    %42 = arith.addf %40, %41 : vector<8x128xf32>
    %43 = math.tanh %42 : vector<8x128xf32>
    %44 = arith.mulf %37, %43 : vector<8x128xf32>
    %c16 = arith.constant 16 : index
    %c0_16 = arith.constant 0 : index
    %45 = vector.load %arg5[%c16, %c0_16] : memref<64x512xf32, #tpu.memory_space<vmem>>, vector<8x512xf32>
    %cst_17 = arith.constant dense<0.000000e+00> : vector<8x512xf32>
    %46 = tpu.matmul %44, %4, %cst_17 {dimension_numbers = #tpu.dot_dimension_numbers<[1], [0], [0], [1], [0, 0, 1, 1], [], []>} : vector<8x128xf32>, vector<128x512xf32>, vector<8x512xf32> -> vector<8x512xf32>
    %47 = arith.addf %45, %46 : vector<8x512xf32>
    %48 = vector.extract_strided_slice %47 {offsets = [0, 0], sizes = [8, 384], strides = [1, 1]} : vector<8x512xf32> to vector<8x384xf32>
    %49 = arith.negf %48 : vector<8x384xf32>
    %50 = math.exp %49 : vector<8x384xf32>
    %cst_18 = arith.constant 1.000000e+00 : f32
    %51 = vector.broadcast %cst_18 : f32 to vector<8x384xf32>
    %52 = arith.addf %51, %50 : vector<8x384xf32>
    %53 = arith.divf %51, %52 : vector<8x384xf32>
    %54 = vector.extract_strided_slice %53 {offsets = [0, 0], sizes = [8, 128], strides = [1, 1]} : vector<8x384xf32> to vector<8x128xf32>
    %55 = vector.extract_strided_slice %53 {offsets = [0, 128], sizes = [8, 128], strides = [1, 1]} : vector<8x384xf32> to vector<8x128xf32>
    %56 = vector.extract_strided_slice %53 {offsets = [0, 256], sizes = [8, 128], strides = [1, 1]} : vector<8x384xf32> to vector<8x128xf32>
    %57 = vector.extract_strided_slice %47 {offsets = [0, 384], sizes = [8, 128], strides = [1, 1]} : vector<8x512xf32> to vector<8x128xf32>
    %58 = math.tanh %57 : vector<8x128xf32>
    %59 = arith.mulf %55, %42 : vector<8x128xf32>
    %60 = arith.mulf %54, %58 : vector<8x128xf32>
    %61 = arith.addf %59, %60 : vector<8x128xf32>
    %62 = math.tanh %61 : vector<8x128xf32>
    %63 = arith.mulf %56, %62 : vector<8x128xf32>
    %c24 = arith.constant 24 : index
    %c0_19 = arith.constant 0 : index
    %64 = vector.load %arg5[%c24, %c0_19] : memref<64x512xf32, #tpu.memory_space<vmem>>, vector<8x512xf32>
    %cst_20 = arith.constant dense<0.000000e+00> : vector<8x512xf32>
    %65 = tpu.matmul %63, %4, %cst_20 {dimension_numbers = #tpu.dot_dimension_numbers<[1], [0], [0], [1], [0, 0, 1, 1], [], []>} : vector<8x128xf32>, vector<128x512xf32>, vector<8x512xf32> -> vector<8x512xf32>
    %66 = arith.addf %64, %65 : vector<8x512xf32>
    %67 = vector.extract_strided_slice %66 {offsets = [0, 0], sizes = [8, 384], strides = [1, 1]} : vector<8x512xf32> to vector<8x384xf32>
    %68 = arith.negf %67 : vector<8x384xf32>
    %69 = math.exp %68 : vector<8x384xf32>
    %cst_21 = arith.constant 1.000000e+00 : f32
    %70 = vector.broadcast %cst_21 : f32 to vector<8x384xf32>
    %71 = arith.addf %70, %69 : vector<8x384xf32>
    %72 = arith.divf %70, %71 : vector<8x384xf32>
    %73 = vector.extract_strided_slice %72 {offsets = [0, 0], sizes = [8, 128], strides = [1, 1]} : vector<8x384xf32> to vector<8x128xf32>
    %74 = vector.extract_strided_slice %72 {offsets = [0, 128], sizes = [8, 128], strides = [1, 1]} : vector<8x384xf32> to vector<8x128xf32>
    %75 = vector.extract_strided_slice %72 {offsets = [0, 256], sizes = [8, 128], strides = [1, 1]} : vector<8x384xf32> to vector<8x128xf32>
    %76 = vector.extract_strided_slice %66 {offsets = [0, 384], sizes = [8, 128], strides = [1, 1]} : vector<8x512xf32> to vector<8x128xf32>
    %77 = math.tanh %76 : vector<8x128xf32>
    %78 = arith.mulf %74, %61 : vector<8x128xf32>
    %79 = arith.mulf %73, %77 : vector<8x128xf32>
    %80 = arith.addf %78, %79 : vector<8x128xf32>
    %81 = math.tanh %80 : vector<8x128xf32>
    %82 = arith.mulf %75, %81 : vector<8x128xf32>
    %c32 = arith.constant 32 : index
    %c0_22 = arith.constant 0 : index
    %83 = vector.load %arg5[%c32, %c0_22] : memref<64x512xf32, #tpu.memory_space<vmem>>, vector<8x512xf32>
    %cst_23 = arith.constant dense<0.000000e+00> : vector<8x512xf32>
    %84 = tpu.matmul %82, %4, %cst_23 {dimension_numbers = #tpu.dot_dimension_numbers<[1], [0], [0], [1], [0, 0, 1, 1], [], []>} : vector<8x128xf32>, vector<128x512xf32>, vector<8x512xf32> -> vector<8x512xf32>
    %85 = arith.addf %83, %84 : vector<8x512xf32>
    %86 = vector.extract_strided_slice %85 {offsets = [0, 0], sizes = [8, 384], strides = [1, 1]} : vector<8x512xf32> to vector<8x384xf32>
    %87 = arith.negf %86 : vector<8x384xf32>
    %88 = math.exp %87 : vector<8x384xf32>
    %cst_24 = arith.constant 1.000000e+00 : f32
    %89 = vector.broadcast %cst_24 : f32 to vector<8x384xf32>
    %90 = arith.addf %89, %88 : vector<8x384xf32>
    %91 = arith.divf %89, %90 : vector<8x384xf32>
    %92 = vector.extract_strided_slice %91 {offsets = [0, 0], sizes = [8, 128], strides = [1, 1]} : vector<8x384xf32> to vector<8x128xf32>
    %93 = vector.extract_strided_slice %91 {offsets = [0, 128], sizes = [8, 128], strides = [1, 1]} : vector<8x384xf32> to vector<8x128xf32>
    %94 = vector.extract_strided_slice %91 {offsets = [0, 256], sizes = [8, 128], strides = [1, 1]} : vector<8x384xf32> to vector<8x128xf32>
    %95 = vector.extract_strided_slice %85 {offsets = [0, 384], sizes = [8, 128], strides = [1, 1]} : vector<8x512xf32> to vector<8x128xf32>
    %96 = math.tanh %95 : vector<8x128xf32>
    %97 = arith.mulf %93, %80 : vector<8x128xf32>
    %98 = arith.mulf %92, %96 : vector<8x128xf32>
    %99 = arith.addf %97, %98 : vector<8x128xf32>
    %100 = math.tanh %99 : vector<8x128xf32>
    %101 = arith.mulf %94, %100 : vector<8x128xf32>
    %c40 = arith.constant 40 : index
    %c0_25 = arith.constant 0 : index
    %102 = vector.load %arg5[%c40, %c0_25] : memref<64x512xf32, #tpu.memory_space<vmem>>, vector<8x512xf32>
    %cst_26 = arith.constant dense<0.000000e+00> : vector<8x512xf32>
    %103 = tpu.matmul %101, %4, %cst_26 {dimension_numbers = #tpu.dot_dimension_numbers<[1], [0], [0], [1], [0, 0, 1, 1], [], []>} : vector<8x128xf32>, vector<128x512xf32>, vector<8x512xf32> -> vector<8x512xf32>
    %104 = arith.addf %102, %103 : vector<8x512xf32>
    %105 = vector.extract_strided_slice %104 {offsets = [0, 0], sizes = [8, 384], strides = [1, 1]} : vector<8x512xf32> to vector<8x384xf32>
    %106 = arith.negf %105 : vector<8x384xf32>
    %107 = math.exp %106 : vector<8x384xf32>
    %cst_27 = arith.constant 1.000000e+00 : f32
    %108 = vector.broadcast %cst_27 : f32 to vector<8x384xf32>
    %109 = arith.addf %108, %107 : vector<8x384xf32>
    %110 = arith.divf %108, %109 : vector<8x384xf32>
    %111 = vector.extract_strided_slice %110 {offsets = [0, 0], sizes = [8, 128], strides = [1, 1]} : vector<8x384xf32> to vector<8x128xf32>
    %112 = vector.extract_strided_slice %110 {offsets = [0, 128], sizes = [8, 128], strides = [1, 1]} : vector<8x384xf32> to vector<8x128xf32>
    %113 = vector.extract_strided_slice %110 {offsets = [0, 256], sizes = [8, 128], strides = [1, 1]} : vector<8x384xf32> to vector<8x128xf32>
    %114 = vector.extract_strided_slice %104 {offsets = [0, 384], sizes = [8, 128], strides = [1, 1]} : vector<8x512xf32> to vector<8x128xf32>
    %115 = math.tanh %114 : vector<8x128xf32>
    %116 = arith.mulf %112, %99 : vector<8x128xf32>
    %117 = arith.mulf %111, %115 : vector<8x128xf32>
    %118 = arith.addf %116, %117 : vector<8x128xf32>
    %119 = math.tanh %118 : vector<8x128xf32>
    %120 = arith.mulf %113, %119 : vector<8x128xf32>
    %c48 = arith.constant 48 : index
    %c0_28 = arith.constant 0 : index
    %121 = vector.load %arg5[%c48, %c0_28] : memref<64x512xf32, #tpu.memory_space<vmem>>, vector<8x512xf32>
    %cst_29 = arith.constant dense<0.000000e+00> : vector<8x512xf32>
    %122 = tpu.matmul %120, %4, %cst_29 {dimension_numbers = #tpu.dot_dimension_numbers<[1], [0], [0], [1], [0, 0, 1, 1], [], []>} : vector<8x128xf32>, vector<128x512xf32>, vector<8x512xf32> -> vector<8x512xf32>
    %123 = arith.addf %121, %122 : vector<8x512xf32>
    %124 = vector.extract_strided_slice %123 {offsets = [0, 0], sizes = [8, 384], strides = [1, 1]} : vector<8x512xf32> to vector<8x384xf32>
    %125 = arith.negf %124 : vector<8x384xf32>
    %126 = math.exp %125 : vector<8x384xf32>
    %cst_30 = arith.constant 1.000000e+00 : f32
    %127 = vector.broadcast %cst_30 : f32 to vector<8x384xf32>
    %128 = arith.addf %127, %126 : vector<8x384xf32>
    %129 = arith.divf %127, %128 : vector<8x384xf32>
    %130 = vector.extract_strided_slice %129 {offsets = [0, 0], sizes = [8, 128], strides = [1, 1]} : vector<8x384xf32> to vector<8x128xf32>
    %131 = vector.extract_strided_slice %129 {offsets = [0, 128], sizes = [8, 128], strides = [1, 1]} : vector<8x384xf32> to vector<8x128xf32>
    %132 = vector.extract_strided_slice %129 {offsets = [0, 256], sizes = [8, 128], strides = [1, 1]} : vector<8x384xf32> to vector<8x128xf32>
    %133 = vector.extract_strided_slice %123 {offsets = [0, 384], sizes = [8, 128], strides = [1, 1]} : vector<8x512xf32> to vector<8x128xf32>
    %134 = math.tanh %133 : vector<8x128xf32>
    %135 = arith.mulf %131, %118 : vector<8x128xf32>
    %136 = arith.mulf %130, %134 : vector<8x128xf32>
    %137 = arith.addf %135, %136 : vector<8x128xf32>
    %138 = math.tanh %137 : vector<8x128xf32>
    %139 = arith.mulf %132, %138 : vector<8x128xf32>
    %c56 = arith.constant 56 : index
    %c0_31 = arith.constant 0 : index
    %140 = vector.load %arg5[%c56, %c0_31] : memref<64x512xf32, #tpu.memory_space<vmem>>, vector<8x512xf32>
    %cst_32 = arith.constant dense<0.000000e+00> : vector<8x512xf32>
    %141 = tpu.matmul %139, %4, %cst_32 {dimension_numbers = #tpu.dot_dimension_numbers<[1], [0], [0], [1], [0, 0, 1, 1], [], []>} : vector<8x128xf32>, vector<128x512xf32>, vector<8x512xf32> -> vector<8x512xf32>
    %142 = arith.addf %140, %141 : vector<8x512xf32>
    %143 = vector.extract_strided_slice %142 {offsets = [0, 0], sizes = [8, 384], strides = [1, 1]} : vector<8x512xf32> to vector<8x384xf32>
    %144 = arith.negf %143 : vector<8x384xf32>
    %145 = math.exp %144 : vector<8x384xf32>
    %cst_33 = arith.constant 1.000000e+00 : f32
    %146 = vector.broadcast %cst_33 : f32 to vector<8x384xf32>
    %147 = arith.addf %146, %145 : vector<8x384xf32>
    %148 = arith.divf %146, %147 : vector<8x384xf32>
    %149 = vector.extract_strided_slice %148 {offsets = [0, 0], sizes = [8, 128], strides = [1, 1]} : vector<8x384xf32> to vector<8x128xf32>
    %150 = vector.extract_strided_slice %148 {offsets = [0, 128], sizes = [8, 128], strides = [1, 1]} : vector<8x384xf32> to vector<8x128xf32>
    %151 = vector.extract_strided_slice %148 {offsets = [0, 256], sizes = [8, 128], strides = [1, 1]} : vector<8x384xf32> to vector<8x128xf32>
    %152 = vector.extract_strided_slice %142 {offsets = [0, 384], sizes = [8, 128], strides = [1, 1]} : vector<8x512xf32> to vector<8x128xf32>
    %153 = math.tanh %152 : vector<8x128xf32>
    %154 = arith.mulf %150, %137 : vector<8x128xf32>
    %155 = arith.mulf %149, %153 : vector<8x128xf32>
    %156 = arith.addf %154, %155 : vector<8x128xf32>
    %157 = math.tanh %156 : vector<8x128xf32>
    %158 = arith.mulf %151, %157 : vector<8x128xf32>
    %c0_34 = arith.constant 0 : index
    %c0_35 = arith.constant 0 : index
    %159 = vector.load %arg3[%c0_34, %c0_35] : memref<152x64xf32, #tpu.memory_space<vmem>>, vector<128x64xf32>
    %c128 = arith.constant 128 : index
    %c0_36 = arith.constant 0 : index
    %160 = vector.load %arg3[%c128, %c0_36] : memref<152x64xf32, #tpu.memory_space<vmem>>, vector<1x64xf32>
    %c136 = arith.constant 136 : index
    %c0_37 = arith.constant 0 : index
    %161 = vector.load %arg3[%c136, %c0_37] : memref<152x64xf32, #tpu.memory_space<vmem>>, vector<1x64xf32>
    %c144 = arith.constant 144 : index
    %c0_38 = arith.constant 0 : index
    %162 = vector.load %arg3[%c144, %c0_38] : memref<152x64xf32, #tpu.memory_space<vmem>>, vector<1x1xf32>
    %cst_39 = arith.constant dense<0.000000e+00> : vector<8x64xf32>
    %163 = tpu.matmul %158, %159, %cst_39 {dimension_numbers = #tpu.dot_dimension_numbers<[1], [0], [0], [1], [0, 0, 1, 1], [], []>} : vector<8x128xf32>, vector<128x64xf32>, vector<8x64xf32> -> vector<8x64xf32>
    %164 = vector.broadcast %160 : vector<1x64xf32> to vector<8x64xf32>
    %165 = arith.addf %163, %164 : vector<8x64xf32>
    %166 = math.tanh %165 : vector<8x64xf32>
    %167 = vector.broadcast %161 : vector<1x64xf32> to vector<8x64xf32>
    %168 = arith.mulf %166, %167 : vector<8x64xf32>
    %cst_40 = arith.constant dense<0.000000e+00> : vector<8xf32>
    %169 = vector.multi_reduction <add>, %168, %cst_40 [1] : vector<8x64xf32> to vector<8xf32>
    %170 = vector.shape_cast %169 : vector<8xf32> to vector<8x1xf32>
    %171 = vector.broadcast %162 : vector<1x1xf32> to vector<8x1xf32>
    %172 = arith.addf %170, %171 : vector<8x1xf32>
    %173 = math.tanh %172 : vector<8x1xf32>
    %c0_41 = arith.constant 0 : index
    %c0_42 = arith.constant 0 : index
    %174 = vector.load %arg4[%c0_41, %c0_42] : memref<8x1xf32, #tpu.memory_space<vmem>>, vector<8x1xf32>
    tpu.vector_store %arg4[%c0_41, %c0_42], %173 {strides = array<i32>} : memref<8x1xf32, #tpu.memory_space<vmem>>, vector<8x1xf32>,
    return
  }
}

</mosaic_0001>

<bundles_post_ra>
// kernel: trajectory_discriminator.1
= control target key start
LH: loop header
LB: loop body
LE: loop exit
PB: predicated region body
PF: predicated region fallthrough
CT: control target
= control target key end

     0   :  { %v3635_v3 = vmov 0.0   ;;  %vm29_vm0 = vcmask 64512   ;;  %vm2177_vm1 = vmmov 0   ;;  %vm1867_vm2 = vcmask 523264   ;;  %s3630_s1 = inlined_call_operand.vmem [shape: f32[8,512], index: 1, kind: input, shape index: {}]   ;;  %s3631_s0 = inlined_call_operand.vmem [shape: f32[64,8], index: 0, kind: input, shape index: {}]   ;;  %s3632_s2 = inlined_call_operand.vmem [shape: f32[128,512], index: 2, kind: input, shape index: {}]   ;;  %s3633_s3 = inlined_call_operand.vmem [shape: f32[152,64], index: 3, kind: input, shape index: {}]   ;;  %s3634_s4 = inlined_call_operand.vmem [shape: f32[8,1], index: 4, kind: output, shape index: {}]  }
   0x1   :  { %v26_v0 = vld [vmem:[%s3630_s1 + $0x8] sm:$0xff]  ;;  %v28_v1 = vld [vmem:[%s3630_s1 + $0x18] sm:$0xff]  ;;  %v25_v2 = vld [vmem:[%s3630_s1] sm:$0xff]  ;;  %118 = vmatprep.mubr.f32.mxu0 %v3635_v3  ;;  %231 = vmatprep.mubr.f32.mxu1 %v3635_v3  ;;  %vm1877_vm3 = vcmask 7168  }
   0x2   :  { %84 = vmatprep.subr.mxu0 %v26_v0  ;;  %197 = vmatprep.subr.mxu1 %v28_v1  ;;  %v27_v4 = vld [vmem:[%s3630_s1 + $0x10] sm:$0xff]  ;;  %v17_v5 = vld [vmem:[%s3631_s0] sm:$0xff]  ;;  %v2223_v6 = vld [vmem:[%s3632_s2 + $0x1e8] sm:$0xff] }
   0x3   :  { %3718 = vst [vmem:[#allocation3_spill] sm:$0xff] %v2223_v6  ;;  %85 = vmatpush1.msra.mxu0 %v25_v2  ;;  %198 = vmatpush1.msra.mxu1 %v27_v4  ;;  %v2228_v7 = vld [vmem:[%s3632_s2 + $0x1f8] sm:$0xff]  ;;  %v2233_v8 = vld [vmem:[%s3632_s2 + $0x1e0] sm:$0xff]  ;;  %v2238_v9 = vld [vmem:[%s3632_s2 + $0x1f0] sm:$0xff] }
   0x4   :  { %3719 = vst [vmem:[#allocation4_spill] sm:$0xff] %v2228_v7  ;;  %1883 = vmatmul.mubr.msk.f32.vlgmr.msra.gmra.mxu0 %vm29_vm0, %v17_v5  ;;  %1891 = vmatmul.mubr.msk.f32.vlgmr.msra.gmra.mxu1 %vm29_vm0, %v17_v5  ;;  %v2245_v10 = vld [vmem:[%s3632_s2 + $0x1c8] sm:$0xff]  ;;  %v2250_v11 = vld [vmem:[%s3632_s2 + $0x1d8] sm:$0xff]  ;;  %v2259_v12 = vld [vmem:[%s3632_s2 + $0x1c0] sm:$0xff] }
   0x5   :  { %380 = vmatprep.subr.mxu0 %v2223_v6  ;;  %451 = vmatprep.subr.mxu1 %v2228_v7  ;;  %v2264_v13 = vld [vmem:[%s3632_s2 + $0x1d0] sm:$0xff]  ;;  %v18_v14 = vld [vmem:[%s3631_s0 + $0x8] sm:$0xff]  ;;  %v2281_v16 = vld [vmem:[%s3632_s2 + $0x1b8] sm:$0xff] }
   0x6   :  { %381 = vmatpush1.msra.mxu0 %v2233_v8  ;;  %452 = vmatpush1.msra.mxu1 %v2238_v9  ;;  %v2276_v15 = vld [vmem:[%s3632_s2 + $0x1a8] sm:$0xff]  ;;  %v2288_v17 = vld [vmem:[%s3632_s2 + $0x1a0] sm:$0xff]  ;;  %v2293_v18 = vld [vmem:[%s3632_s2 + $0x1b0] sm:$0xff] }
   0x7   :  { %382 = vmatprep.subr.mxu0 %v2245_v10  ;;  %453 = vmatprep.subr.mxu1 %v2250_v11  ;;  %v2300_v19 = vld [vmem:[%s3632_s2 + $0x188] sm:$0xff]  ;;  %v2305_v20 = vld [vmem:[%s3632_s2 + $0x198] sm:$0xff]  ;;  %v2314_v21 = vld [vmem:[%s3632_s2 + $0x180] sm:$0xff] }
   0x8   :  { %124 = vmatprep.mubr.f32.mxu0 %v3635_v3  ;;  %237 = vmatprep.mubr.f32.mxu1 %v3635_v3  ;;  %v2319_v22 = vld [vmem:[%s3632_s2 + $0x190] sm:$0xff]  ;;  %v2331_v24 = vld [vmem:[%s3632_s2 + $0x168] sm:$0xff]  ;;  %v2336_v25 = vld [vmem:[%s3632_s2 + $0x178] sm:$0xff] }
   0x9   :  { %383 = vmatpush1.msra.mxu0 %v2259_v12  ;;  %454 = vmatpush1.msra.mxu1 %v2264_v13  ;;  %v19_v23 = vld [vmem:[%s3631_s0 + $0x10] sm:$0xff]  ;;  %v2343_v26 = vld [vmem:[%s3632_s2 + $0x160] sm:$0xff]  ;;  %v2355_v28 = vld [vmem:[%s3632_s2 + $0x148] sm:$0xff] }
   0xa   :  { %1884 = vmatmul.mubr.msk.f32.gmra.mxu0 %vm29_vm0, %v18_v14  ;;  %1892 = vmatmul.mubr.msk.f32.gmra.mxu1 %vm29_vm0, %v18_v14  ;;  %v2348_v27 = vld [vmem:[%s3632_s2 + $0x170] sm:$0xff]  ;;  %v2360_v29 = vld [vmem:[%s3632_s2 + $0x158] sm:$0xff]  ;;  %v2369_v30 = vld [vmem:[%s3632_s2 + $0x140] sm:$0xff] }
   0xb   :  { %384 = vmatprep.subr.mxu0 %v2276_v15  ;;  %455 = vmatprep.subr.mxu1 %v2281_v16  ;;  %v2374_v31 = vld [vmem:[%s3632_s2 + $0x150] sm:$0xff]  ;;  %v20_v32 = vld [vmem:[%s3631_s0 + $0x18] sm:$0xff]  ;;  %v2386_v33 = vld [vmem:[%s3632_s2 + $0x128] sm:$0xff] }
   0xc   :  { %385 = vmatpush1.msra.mxu0 %v2288_v17  ;;  %456 = vmatpush1.msra.mxu1 %v2293_v18  ;;  %v2391_v34 = vld [vmem:[%s3632_s2 + $0x138] sm:$0xff]  ;;  %v2398_v35 = vld [vmem:[%s3632_s2 + $0x120] sm:$0xff]  ;;  %v2403_v36 = vld [vmem:[%s3632_s2 + $0x130] sm:$0xff] }
   0xd   :  { %386 = vmatprep.subr.mxu0 %v2300_v19  ;;  %457 = vmatprep.subr.mxu1 %v2305_v20  ;;  %v2410_v37 = vld [vmem:[%s3632_s2 + $0x108] sm:$0xff]  ;;  %v2415_v38 = vld [vmem:[%s3632_s2 + $0x118] sm:$0xff]  ;;  %v2424_v39 = vld [vmem:[%s3632_s2 + $0x100] sm:$0xff] }
   0xe   :  { %130 = vmatprep.mubr.f32.mxu0 %v3635_v3  ;;  %243 = vmatprep.mubr.f32.mxu1 %v3635_v3  ;;  %v2429_v40 = vld [vmem:[%s3632_s2 + $0x110] sm:$0xff]  ;;  %v21_v41 = vld [vmem:[%s3631_s0 + $0x20] sm:$0xff]  ;;  %v2441_v42 = vld [vmem:[%s3632_s2 + $0xe8] sm:$0xff] }
   0xf   :  { %387 = vmatpush1.msra.mxu0 %v2314_v21  ;;  %458 = vmatpush1.msra.mxu1 %v2319_v22  ;;  %v2446_v43 = vld [vmem:[%s3632_s2 + $0xf8] sm:$0xff]  ;;  %v2453_v44 = vld [vmem:[%s3632_s2 + $0xe0] sm:$0xff]  ;;  %v2458_v45 = vld [vmem:[%s3632_s2 + $0xf0] sm:$0xff] }
  0x10   :  { %1885 = vmatmul.mubr.msk.f32.gmra.mxu0 %vm29_vm0, %v19_v23  ;;  %1893 = vmatmul.mubr.msk.f32.gmra.mxu1 %vm29_vm0, %v19_v23  ;;  %v2465_v46 = vld [vmem:[%s3632_s2 + $0xc8] sm:$0xff]  ;;  %v2470_v47 = vld [vmem:[%s3632_s2 + $0xd8] sm:$0xff]  ;;  %v2479_v48 = vld [vmem:[%s3632_s2 + $0xc0] sm:$0xff] }
  0x11   :  { %388 = vmatprep.subr.mxu0 %v2331_v24  ;;  %459 = vmatprep.subr.mxu1 %v2336_v25  ;;  %v2484_v49 = vld [vmem:[%s3632_s2 + $0xd0] sm:$0xff]  ;;  %v22_v50 = vld [vmem:[%s3631_s0 + $0x28] sm:$0xff]  ;;  %v2501_v52 = vld [vmem:[%s3632_s2 + $0xb8] sm:$0xff] }
  0x12   :  { %389 = vmatpush1.msra.mxu0 %v2343_v26  ;;  %460 = vmatpush1.msra.mxu1 %v2348_v27  ;;  %v2496_v51 = vld [vmem:[%s3632_s2 + $0xa8] sm:$0xff]  ;;  %v2508_v53 = vld [vmem:[%s3632_s2 + $0xa0] sm:$0xff]  ;;  %v2513_v54 = vld [vmem:[%s3632_s2 + $0xb0] sm:$0xff] }
  0x13   :  { %390 = vmatprep.subr.mxu0 %v2355_v28  ;;  %461 = vmatprep.subr.mxu1 %v2360_v29  ;;  %v2520_v55 = vld [vmem:[%s3632_s2 + $0x88] sm:$0xff]  ;;  %v2525_v56 = vld [vmem:[%s3632_s2 + $0x98] sm:$0xff]  ;;  %v2534_v57 = vld [vmem:[%s3632_s2 + $0x80] sm:$0xff] }
  0x14   :  { %136 = vmatprep.mubr.f32.mxu0 %v3635_v3  ;;  %249 = vmatprep.mubr.f32.mxu1 %v3635_v3  ;;  %3720 = vst [vmem:[#allocation5_spill] sm:$0xff] %v2534_v57  ;;  %v2539_v58 = vld [vmem:[%s3632_s2 + $0x90] sm:$0xff]  ;;  %v2551_v60 = vld [vmem:[%s3632_s2 + $0x68] sm:$0xff]  ;;  %v2556_v61 = vld [vmem:[%s3632_s2 + $0x78] sm:$0xff] }
  0x15   :  { %391 = vmatpush1.msra.mxu0 %v2369_v30  ;;  %462 = vmatpush1.msra.mxu1 %v2374_v31  ;;  %3721 = vst [vmem:[#allocation6_spill] sm:$0xff] %v2539_v58  ;;  %v23_v59 = vld [vmem:[%s3631_s0 + $0x30] sm:$0xff]  ;;  %3722 = vst [vmem:[#allocation7_spill] sm:$0xff] %v2551_v60  ;;  %v2563_v62 = vld [vmem:[%s3632_s2 + $0x60] sm:$0xff] }
  0x16   :  { %1886 = vmatmul.mubr.msk.f32.gmra.mxu0 %vm29_vm0, %v20_v32  ;;  %1894 = vmatmul.mubr.msk.f32.gmra.mxu1 %vm29_vm0, %v20_v32  ;;  %3723 = vst [vmem:[#allocation8_spill] sm:$0xff] %v2556_v61  ;;  %3724 = vst [vmem:[#allocation9_spill] sm:$0xff] %v2563_v62  ;;  %v2568_v63 = vld [vmem:[%s3632_s2 + $0x70] sm:$0xff]  ;;  %v2575_v0 = vld [vmem:[%s3632_s2 + $0x48] sm:$0xff] }
  0x17   :  { %392 = vmatprep.subr.mxu0 %v2386_v33  ;;  %463 = vmatprep.subr.mxu1 %v2391_v34  ;;  %3725 = vst [vmem:[#allocation10_spill] sm:$0xff] %v2568_v63  ;;  %3726 = vst [vmem:[#allocation11_spill] sm:$0xff] %v2575_v0  ;;  %v2580_v1 = vld [vmem:[%s3632_s2 + $0x58] sm:$0xff]  ;;  %v2589_v2 = vld [vmem:[%s3632_s2 + $0x40] sm:$0xff] }
  0x18   :  { %393 = vmatpush1.msra.mxu0 %v2398_v35  ;;  %464 = vmatpush1.msra.mxu1 %v2403_v36  ;;  %3727 = vst [vmem:[#allocation12_spill] sm:$0xff] %v2580_v1  ;;  %3728 = vst [vmem:[#allocation13_spill] sm:$0xff] %v2589_v2  ;;  %v2594_v4 = vld [vmem:[%s3632_s2 + $0x50] sm:$0xff]  ;;  %v24_v5 = vld [vmem:[%s3631_s0 + $0x38] sm:$0xff] }
  0x19   :  { %394 = vmatprep.subr.mxu0 %v2410_v37  ;;  %465 = vmatprep.subr.mxu1 %v2415_v38  ;;  %3729 = vst [vmem:[#allocation14_spill] sm:$0xff] %v2594_v4  ;;  %v2606_v14 = vld [vmem:[%s3632_s2 + $0x28] sm:$0xff]  ;;  %v2611_v23 = vld [vmem:[%s3632_s2 + $0x38] sm:$0xff]  ;;  %v2618_v32 = vld [vmem:[%s3632_s2 + $0x20] sm:$0xff] }
  0x1a   :  { %142 = vmatprep.mubr.f32.mxu0 %v3635_v3  ;;  %255 = vmatprep.mubr.f32.mxu1 %v3635_v3  ;;  %3730 = vst [vmem:[#allocation15_spill] sm:$0xff] %v2606_v14  ;;  %3731 = vst [vmem:[#allocation16_spill] sm:$0xff] %v2611_v23 }
  0x1b   :  { %395 = vmatpush1.msra.mxu0 %v2424_v39  ;;  %466 = vmatpush1.msra.mxu1 %v2429_v40  ;;  %3732 = vst [vmem:[#allocation17_spill] sm:$0xff] %v2618_v32 }
  0x1c   :  { %1887 = vmatmul.mubr.msk.f32.gmra.mxu0 %vm29_vm0, %v21_v41  ;;  %1895 = vmatmul.mubr.msk.f32.gmra.mxu1 %vm29_vm0, %v21_v41  ;;  %v2623_v41 = vld [vmem:[%s3632_s2 + $0x30] sm:$0xff] }
  0x1d   :  { %396 = vmatprep.subr.mxu0 %v2441_v42  ;;  %467 = vmatprep.subr.mxu1 %v2446_v43  ;;  %3733 = vst [vmem:[#allocation18_spill] sm:$0xff] %v2623_v41 }
  0x1e   :  { %397 = vmatpush1.msra.mxu0 %v2453_v44  ;;  %468 = vmatpush1.msra.mxu1 %v2458_v45 }
  0x1f   :  { %398 = vmatprep.subr.mxu0 %v2465_v46  ;;  %469 = vmatprep.subr.mxu1 %v2470_v47 }
  0x20   :  { %148 = vmatprep.mubr.f32.mxu0 %v3635_v3  ;;  %261 = vmatprep.mubr.f32.mxu1 %v3635_v3 }
  0x21   :  { %399 = vmatpush1.msra.mxu0 %v2479_v48  ;;  %470 = vmatpush1.msra.mxu1 %v2484_v49 }
  0x22   :  { %1888 = vmatmul.mubr.msk.f32.gmra.mxu0 %vm29_vm0, %v22_v50  ;;  %1896 = vmatmul.mubr.msk.f32.gmra.mxu1 %vm29_vm0, %v22_v50  ;;  %v2630_v50 = vld [vmem:[%s3632_s2 + $0x8] sm:$0xff] }
  0x23   :  { %400 = vmatprep.subr.mxu0 %v2496_v51  ;;  %471 = vmatprep.subr.mxu1 %v2501_v52  ;;  %3734 = vst [vmem:[#allocation19_spill] sm:$0xff] %v2630_v50 }
  0x24   :  { %401 = vmatpush1.msra.mxu0 %v2508_v53  ;;  %472 = vmatpush1.msra.mxu1 %v2513_v54 }
  0x25   :  { %402 = vmatprep.subr.mxu0 %v2520_v55  ;;  %473 = vmatprep.subr.mxu1 %v2525_v56 }
  0x26   :  { %154 = vmatprep.mubr.f32.mxu0 %v3635_v3  ;;  %267 = vmatprep.mubr.f32.mxu1 %v3635_v3 }
  0x27   :  { %403 = vmatpush1.msra.mxu0 %v2534_v57  ;;  %474 = vmatpush1.msra.mxu1 %v2539_v58 }
  0x28   :  { %1889 = vmatmul.mubr.msk.f32.gmra.mxu0 %vm29_vm0, %v23_v59  ;;  %1897 = vmatmul.mubr.msk.f32.gmra.mxu1 %vm29_vm0, %v23_v59  ;;  %v2635_v59 = vld [vmem:[%s3632_s2 + $0x18] sm:$0xff] }
  0x29   :  { %404 = vmatprep.subr.mxu0 %v2551_v60  ;;  %475 = vmatprep.subr.mxu1 %v2556_v61  ;;  %3735 = vst [vmem:[#allocation20_spill] sm:$0xff] %v2635_v59 }
  0x2a   :  { %405 = vmatpush1.msra.mxu0 %v2563_v62  ;;  %476 = vmatpush1.msra.mxu1 %v2568_v63 }
  0x2b   :  { %406 = vmatprep.subr.mxu0 %v2575_v0  ;;  %477 = vmatprep.subr.mxu1 %v2580_v1 }
  0x2c   :  { %160 = vmatprep.mubr.f32.mxu0 %v3635_v3  ;;  %273 = vmatprep.mubr.f32.mxu1 %v3635_v3  ;;  %v2642_v3 = vld [vmem:[%s3632_s2] sm:$0xff] }
  0x2d   :  { %407 = vmatpush1.msra.mxu0 %v2589_v2  ;;  %478 = vmatpush1.msra.mxu1 %v2594_v4  ;;  %3736 = vst [vmem:[#allocation21_spill] sm:$0xff] %v2642_v3 }
  0x2e   :  { %1890 = vmatmul.mubr.msk.f32.gmra.mxu0 %vm29_vm0, %v24_v5  ;;  %1898 = vmatmul.mubr.msk.f32.gmra.mxu1 %vm29_vm0, %v24_v5  ;;  %v2649_v5 = vld [vmem:[%s3632_s2 + $0x10] sm:$0xff] }
  0x2f   :  { %408 = vmatprep.subr.mxu0 %v2606_v14  ;;  %479 = vmatprep.subr.mxu1 %v2611_v23  ;;  %3737 = vst [vmem:[#allocation22_spill] sm:$0xff] %v2649_v5  ;;  %v3738_v23 = vmov 0.0  }
  0x30   :  { %409 = vmatpush1.msra.mxu0 %v2618_v32  ;;  %480 = vmatpush1.msra.mxu1 %v2623_v41 }
  0x31   :  { %410 = vmatprep.subr.mxu0 %v2630_v50  ;;  %481 = vmatprep.subr.mxu1 %v2635_v59 }
  0x32   :  { %411 = vmatpush1.msra.mxu0 %v2642_v3  ;;  %444 = vmatprep.mubr.f32.mxu0 %v3738_v23 }
  0x33   :  { %482 = vmatpush1.msra.mxu1 %v2649_v5  ;;  %515 = vmatprep.mubr.f32.mxu1 %v3738_v23 }
  0x34   :  { %445 = vmatmul.mubr.f32.vlgmr.msra.gmra.mxu0 %v3738_v23  ;;  %516 = vmatmul.mubr.f32.vlgmr.msra.gmra.mxu1 %v3738_v23 }
  0x35   :  { %554 = vmatprep.subr.mxu0 %v2223_v6  ;;  %625 = vmatprep.subr.mxu1 %v2228_v7 }
  0x36   :  { %555 = vmatpush1.msra.mxu0 %v2233_v8  ;;  %626 = vmatpush1.msra.mxu1 %v2238_v9 }
  0x37   :  { %556 = vmatprep.subr.mxu0 %v2245_v10  ;;  %627 = vmatprep.subr.mxu1 %v2250_v11 }
  0x38   :  { %557 = vmatpush1.msra.mxu0 %v2259_v12  ;;  %628 = vmatpush1.msra.mxu1 %v2264_v13 }
  0x39   :  { %558 = vmatprep.subr.mxu0 %v2276_v15  ;;  %629 = vmatprep.subr.mxu1 %v2281_v16 }
  0x3a   :  { %559 = vmatpush1.msra.mxu0 %v2288_v17  ;;  %630 = vmatpush1.msra.mxu1 %v2293_v18 }
  0x3b   :  { %560 = vmatprep.subr.mxu0 %v2300_v19  ;;  %631 = vmatprep.subr.mxu1 %v2305_v20 }
  0x3c   :  { %561 = vmatpush1.msra.mxu0 %v2314_v21  ;;  %632 = vmatpush1.msra.mxu1 %v2319_v22 }
  0x3d   :  { %562 = vmatprep.subr.mxu0 %v2331_v24  ;;  %633 = vmatprep.subr.mxu1 %v2336_v25 }
  0x3e   :  { %563 = vmatpush1.msra.mxu0 %v2343_v26  ;;  %634 = vmatpush1.msra.mxu1 %v2348_v27 }
  0x3f   :  { %564 = vmatprep.subr.mxu0 %v2355_v28  ;;  %635 = vmatprep.subr.mxu1 %v2360_v29 }
  0x40   :  { %565 = vmatpush1.msra.mxu0 %v2369_v30  ;;  %636 = vmatpush1.msra.mxu1 %v2374_v31 }
  0x41   :  { %566 = vmatprep.subr.mxu0 %v2386_v33  ;;  %637 = vmatprep.subr.mxu1 %v2391_v34 }
  0x42   :  { %567 = vmatpush1.msra.mxu0 %v2398_v35  ;;  %638 = vmatpush1.msra.mxu1 %v2403_v36 }
  0x43   :  { %568 = vmatprep.subr.mxu0 %v2410_v37  ;;  %639 = vmatprep.subr.mxu1 %v2415_v38 }
  0x44   :  { %569 = vmatpush1.msra.mxu0 %v2424_v39  ;;  %640 = vmatpush1.msra.mxu1 %v2429_v40 }
  0x45   :  { %570 = vmatprep.subr.mxu0 %v2441_v42  ;;  %641 = vmatprep.subr.mxu1 %v2446_v43 }
  0x46   :  { %571 = vmatpush1.msra.mxu0 %v2453_v44  ;;  %642 = vmatpush1.msra.mxu1 %v2458_v45 }
  0x47   :  { %572 = vmatprep.subr.mxu0 %v2465_v46  ;;  %643 = vmatprep.subr.mxu1 %v2470_v47 }
  0x48   :  { %573 = vmatpush1.msra.mxu0 %v2479_v48  ;;  %644 = vmatpush1.msra.mxu1 %v2484_v49 }
  0x49   :  { %574 = vmatprep.subr.mxu0 %v2496_v51  ;;  %645 = vmatprep.subr.mxu1 %v2501_v52 }
  0x4a   :  { %575 = vmatpush1.msra.mxu0 %v2508_v53  ;;  %646 = vmatpush1.msra.mxu1 %v2513_v54 }
  0x4b   :  { %576 = vmatprep.subr.mxu0 %v2520_v55  ;;  %647 = vmatprep.subr.mxu1 %v2525_v56 }
  0x4c   :  { %577 = vmatpush1.msra.mxu0 %v2534_v57  ;;  %648 = vmatpush1.msra.mxu1 %v2539_v58  ;;  %v3739_v57 = vld [vmem:[#allocation16_spill] sm:$0xff] }
  0x4d   :  { %578 = vmatprep.subr.mxu0 %v2551_v60  ;;  %649 = vmatprep.subr.mxu1 %v2556_v61 }
  0x4e   :  { %579 = vmatpush1.msra.mxu0 %v2563_v62  ;;  %650 = vmatpush1.msra.mxu1 %v2568_v63 }
  0x4f   :  { %580 = vmatprep.subr.mxu0 %v2575_v0  ;;  %651 = vmatprep.subr.mxu1 %v2580_v1 }
  0x50   :  { %581 = vmatpush1.msra.mxu0 %v2589_v2  ;;  %652 = vmatpush1.msra.mxu1 %v2594_v4 }
  0x51   :  { %582 = vmatprep.subr.mxu0 %v2606_v14  ;;  %653 = vmatprep.subr.mxu1 %v3739_v57 }
  0x52   :  { %583 = vmatpush1.msra.mxu0 %v2618_v32  ;;  %654 = vmatpush1.msra.mxu1 %v2623_v41 }
  0x53   :  { %584 = vmatprep.subr.mxu0 %v2630_v50  ;;  %655 = vmatprep.subr.mxu1 %v2635_v59 }
  0x54   :  { %585 = vmatpush1.msra.mxu0 %v2642_v3  ;;  %618 = vmatprep.mubr.f32.mxu0 %v3738_v23 }
  0x55   :  { %656 = vmatpush1.msra.mxu1 %v2649_v5  ;;  %689 = vmatprep.mubr.f32.mxu1 %v3738_v23 }
  0x56   :  { %728 = vmatprep.subr.mxu0 %v2223_v6  ;;  %799 = vmatprep.subr.mxu1 %v2228_v7 }
  0xc4   :  { %v120_v57 = vpop.f32.mrf.mxu0  ;;  %v233_v32 = vpop.f32.mrf.mxu1 }
  0xc6   :  { %v122_v14 = vpop.f32.mrf.mxu0  ;;  %v235_v41 = vpop.f32.mrf.mxu1 }
  0xca   :  { %v2727_v4 = vpop.f32.mrf.mxu0  ;;  %v2729_v50 = vpop.f32.mrf.mxu1 }
  0xcb   :  { %3740 = vst [vmem:[#allocation23_spill] sm:$0xff] %v2727_v4  ;;  %3741 = vst [vmem:[#allocation24_spill] sm:$0xff] %v2729_v50 }
  0xcc   :  { %v2731_v59 = vpop.f32.mrf.mxu0  ;;  %v2733_v3 = vpop.f32.mrf.mxu1 }
  0xcd   :  { %3742 = vst [vmem:[#allocation25_spill] sm:$0xff] %v2731_v59  ;;  %3743 = vst [vmem:[#allocation26_spill] sm:$0xff] %v2733_v3 }
  0xd0   :  { %v2735_v2 = vpop.f32.mrf.mxu0  ;;  %v2737_v5 = vpop.f32.mrf.mxu1 }
  0xd1   :  { %3744 = vst [vmem:[#allocation27_spill] sm:$0xff] %v2735_v2  ;;  %3745 = vst [vmem:[#allocation28_spill] sm:$0xff] %v2737_v5 }
  0xd2   :  { %v2739_v23 = vpop.f32.mrf.mxu0  ;;  %v2741_v6 = vpop.f32.mrf.mxu1 }
  0xd3   :  { %3746 = vst [vmem:[#allocation29_spill] sm:$0xff] %v2739_v23  ;;  %3747 = vst [vmem:[#allocation30_spill] sm:$0xff] %v2741_v6 }
  0xd6   :  { %v2743_v7 = vpop.f32.mrf.mxu0  ;;  %v2745_v1 = vpop.f32.mrf.mxu1 }
  0xd7   :  { %3748 = vst [vmem:[#allocation31_spill] sm:$0xff] %v2743_v7  ;;  %3749 = vst [vmem:[#allocation32_spill] sm:$0xff] %v2745_v1 }
  0xd8   :  { %v2747_v0 = vpop.f32.mrf.mxu0  ;;  %v2749_v4 = vpop.f32.mrf.mxu1 }
  0xd9   :  { %3750 = vst [vmem:[#allocation33_spill] sm:$0xff] %v2747_v0  ;;  %3751 = vst [vmem:[#allocation34_spill] sm:$0xff] %v2749_v4 }
  0xdc   :  { %v2751_v50 = vpop.f32.mrf.mxu0  ;;  %v2753_v59 = vpop.f32.mrf.mxu1 }
  0xdd   :  { %3752 = vst [vmem:[#allocation35_spill] sm:$0xff] %v2751_v50  ;;  %3753 = vst [vmem:[#allocation36_spill] sm:$0xff] %v2753_v59 }
  0xde   :  { %v2755_v3 = vpop.f32.mrf.mxu0  ;;  %v2757_v2 = vpop.f32.mrf.mxu1 }
  0xdf   :  { %3754 = vst [vmem:[#allocation37_spill] sm:$0xff] %v2755_v3  ;;  %3755 = vst [vmem:[#allocation38_spill] sm:$0xff] %v2757_v2 }
  0xe2   :  { %v2759_v5 = vpop.f32.mrf.mxu0  ;;  %v2763_v6 = vpop.f32.mrf.mxu1 }
  0xe3   :  { %3756 = vst [vmem:[#allocation39_spill] sm:$0xff] %v2759_v5  ;;  %3758 = vst [vmem:[#allocation41_spill] sm:$0xff] %v2763_v6 }
  0xe4   :  { %v2761_v23 = vpop.f32.mrf.mxu0  ;;  %v2767_v1 = vpop.f32.mrf.mxu1 }
  0xe5   :  { %3757 = vst [vmem:[#allocation40_spill] sm:$0xff] %v2761_v23  ;;  %3760 = vst [vmem:[#allocation43_spill] sm:$0xff] %v2767_v1 }
  0xe8   :  { %v2765_v7 = vpop.f32.mrf.mxu0  ;;  %v2771_v4 = vpop.f32.mrf.mxu1 }
  0xe9   :  { %3759 = vst [vmem:[#allocation42_spill] sm:$0xff] %v2765_v7  ;;  %3762 = vst [vmem:[#allocation45_spill] sm:$0xff] %v2771_v4 }
  0xea   :  { %v2769_v0 = vpop.f32.mrf.mxu0  ;;  %v2777_v3 = vpop.f32.mrf.mxu1 }
  0xeb   :  { %3761 = vst [vmem:[#allocation44_spill] sm:$0xff] %v2769_v0  ;;  %3765 = vst [vmem:[#allocation48_spill] sm:$0xff] %v2777_v3 }
  0xee   :  { %v2773_v50 = vpop.f32.mrf.mxu0  ;;  %v2779_v5 = vpop.f32.mrf.mxu1 }
  0xef   :  { %3763 = vst [vmem:[#allocation46_spill] sm:$0xff] %v2773_v50  ;;  %3766 = vst [vmem:[#allocation49_spill] sm:$0xff] %v2779_v5 }
  0xf0   :  { %v2775_v59 = vpop.f32.mrf.mxu0  ;;  %v2781_v7 = vpop.f32.mrf.mxu1 }
  0xf1   :  { %3764 = vst [vmem:[#allocation47_spill] sm:$0xff] %v2775_v59  ;;  %3767 = vst [vmem:[#allocation50_spill] sm:$0xff] %v2781_v7  ;;  %v3786_v7 = vld [vmem:[#allocation22_spill] sm:$0xff] }
  0xf4   :  { %v446_v2 = vpop.f32.mrf.mxu0  ;;  %v517_v0 = vpop.f32.mrf.mxu1 }
  0xf5   :  { %v522_v23 = vadd.f32 %v446_v2, %v120_v57  ;;  %v524_v4 = vadd.f32 %v517_v0, %v233_v32  ;;  %v3771_v32 = vld [vmem:[#allocation8_spill] sm:$0xff] }
  0xf6   :  { %v448_v63 = vpop.f32.mrf.mxu0  ;;  %v519_v61 = vpop.f32.mrf.mxu1 }
  0xf7   :  { %v1899_v6 = vmul.f32 -1.442695, %v522_v23  ;;  %v523_v62 = vadd.f32 %v448_v63, %v122_v14  ;;  %v1901_v50 = vmul.f32 -1.442695, %v524_v4  ;;  %v525_v59 = vadd.f32 %v519_v61, %v235_v41  ;;  %v3770_v4 = vld [vmem:[#allocation7_spill] sm:$0xff]  ;;  %v3772_v41 = vld [vmem:[#allocation9_spill] sm:$0xff] }
  0xf9   :  { %1980 = vpow2.f32 %v1899_v6  ;;  %v1900_v1 = vmul.f32 -1.442695, %v523_v62 }
  0xfb   :  { %1982 = vpow2.f32 %v1900_v1 }
  0xfc   :  { %1984 = vpow2.f32 %v1901_v50  ;;  %v3773_v50 = vld [vmem:[#allocation10_spill] sm:$0xff] }
 0x106   :  { %v1981_v60 = vpop.eup %1980 }
 0x107   :  { %v535_v58 = vadd.f32 1.0, %v1981_v60 }
 0x108   :  { %v1983_v3 = vpop.eup %1982 }
 0x109   :  { %1986 = vrcp.f32 %v535_v58  ;;  %v536_v5 = vadd.f32 1.0, %v1983_v3  ;;  %v1985_v57 = vpop.eup %1984  ;;  %v3768_v3 = vld [vmem:[#allocation5_spill] sm:$0xff]  ;;  %v3769_v58 = vld [vmem:[#allocation6_spill] sm:$0xff] }
 0x10a   :  { %1988 = vtanh.f32 %v525_v59  ;;  %v537_v6 = vadd.f32 1.0, %v1985_v57  ;;  %v3774_v59 = vld [vmem:[#allocation11_spill] sm:$0xff]  ;;  %v3776_v57 = vld [vmem:[#allocation13_spill] sm:$0xff] }
 0x10b   :  { %1990 = vrcp.f32 %v536_v5  ;;  %v3775_v5 = vld [vmem:[#allocation12_spill] sm:$0xff] }
 0x10c   :  { %1992 = vrcp.f32 %v537_v6  ;;  %v3780_v6 = vld [vmem:[#allocation17_spill] sm:$0xff] }
 0x116   :  { %v1987_v63 = vpop.eup %1986 }
 0x117   :  { %v1989_v2 = vpop.eup %1988 }
 0x118   :  { %v1991_v14 = vpop.eup %1990  ;;  %v546_v1 = vmul.f32 %v1989_v2, %v1987_v63  ;;  %v3777_v63 = vld [vmem:[#allocation14_spill] sm:$0xff]  ;;  %v3778_v2 = vld [vmem:[#allocation15_spill] sm:$0xff] }
 0x119   :  { %v545_v62 = vmul.f32 0.0, %v1991_v14  ;;  %v1993_v61 = vpop.eup %1992  ;;  %v3779_v14 = vld [vmem:[#allocation16_spill] sm:$0xff] }
 0x11b   :  { %v2783_v23 = vadd.f32 %v546_v1, %v545_v62  ;;  %v3781_v62 = vld [vmem:[#allocation18_spill] sm:$0xff]  ;;  %v3782_v1 = vld [vmem:[#allocation19_spill] sm:$0xff] }
 0x11d   :  { %1994 = vtanh.f32 %v2783_v23 }
 0x12a   :  { %v1995_v60 = vpop.eup %1994 }
 0x12b   :  { %v549_v0 = vmul.f32 %v1995_v60, %v1993_v61  ;;  %v3783_v61 = vld [vmem:[#allocation20_spill] sm:$0xff]  ;;  %v3784_v60 = vld [vmem:[#allocation21_spill] sm:$0xff] }
 0x12d   :  { %619 = vmatmul.mubr.f32.vlgmr.msra.gmra.mxu0 %v549_v0  ;;  %690 = vmatmul.mubr.f32.vlgmr.msra.gmra.mxu1 %v549_v0  ;;  %v3785_v0 = vmov 0.0  }
 0x12e   :  { %729 = vmatpush1.msra.mxu0 %v2233_v8  ;;  %800 = vmatpush1.msra.mxu1 %v2238_v9 }
 0x12f   :  { %730 = vmatprep.subr.mxu0 %v2245_v10  ;;  %801 = vmatprep.subr.mxu1 %v2250_v11 }
 0x130   :  { %731 = vmatpush1.msra.mxu0 %v2259_v12  ;;  %802 = vmatpush1.msra.mxu1 %v2264_v13 }
 0x131   :  { %732 = vmatprep.subr.mxu0 %v2276_v15  ;;  %803 = vmatprep.subr.mxu1 %v2281_v16 }
 0x132   :  { %733 = vmatpush1.msra.mxu0 %v2288_v17  ;;  %804 = vmatpush1.msra.mxu1 %v2293_v18 }
 0x133   :  { %734 = vmatprep.subr.mxu0 %v2300_v19  ;;  %805 = vmatprep.subr.mxu1 %v2305_v20 }
 0x134   :  { %735 = vmatpush1.msra.mxu0 %v2314_v21  ;;  %806 = vmatpush1.msra.mxu1 %v2319_v22 }
 0x135   :  { %736 = vmatprep.subr.mxu0 %v2331_v24  ;;  %807 = vmatprep.subr.mxu1 %v2336_v25 }
 0x136   :  { %737 = vmatpush1.msra.mxu0 %v2343_v26  ;;  %808 = vmatpush1.msra.mxu1 %v2348_v27 }
 0x137   :  { %738 = vmatprep.subr.mxu0 %v2355_v28  ;;  %809 = vmatprep.subr.mxu1 %v2360_v29 }
 0x138   :  { %739 = vmatpush1.msra.mxu0 %v2369_v30  ;;  %810 = vmatpush1.msra.mxu1 %v2374_v31 }
 0x139   :  { %740 = vmatprep.subr.mxu0 %v2386_v33  ;;  %811 = vmatprep.subr.mxu1 %v2391_v34 }
 0x13a   :  { %741 = vmatpush1.msra.mxu0 %v2398_v35  ;;  %812 = vmatpush1.msra.mxu1 %v2403_v36 }
 0x13b   :  { %742 = vmatprep.subr.mxu0 %v2410_v37  ;;  %813 = vmatprep.subr.mxu1 %v2415_v38 }
 0x13c   :  { %743 = vmatpush1.msra.mxu0 %v2424_v39  ;;  %814 = vmatpush1.msra.mxu1 %v2429_v40 }
 0x13d   :  { %744 = vmatprep.subr.mxu0 %v2441_v42  ;;  %815 = vmatprep.subr.mxu1 %v2446_v43 }
 0x13e   :  { %745 = vmatpush1.msra.mxu0 %v2453_v44  ;;  %816 = vmatpush1.msra.mxu1 %v2458_v45 }
 0x13f   :  { %746 = vmatprep.subr.mxu0 %v2465_v46  ;;  %817 = vmatprep.subr.mxu1 %v2470_v47 }
 0x140   :  { %747 = vmatpush1.msra.mxu0 %v2479_v48  ;;  %818 = vmatpush1.msra.mxu1 %v2484_v49 }
 0x141   :  { %748 = vmatprep.subr.mxu0 %v2496_v51  ;;  %819 = vmatprep.subr.mxu1 %v2501_v52 }
 0x142   :  { %749 = vmatpush1.msra.mxu0 %v2508_v53  ;;  %820 = vmatpush1.msra.mxu1 %v2513_v54 }
 0x143   :  { %750 = vmatprep.subr.mxu0 %v2520_v55  ;;  %821 = vmatprep.subr.mxu1 %v2525_v56 }
 0x144   :  { %751 = vmatpush1.msra.mxu0 %v3768_v3  ;;  %822 = vmatpush1.msra.mxu1 %v3769_v58 }
 0x145   :  { %752 = vmatprep.subr.mxu0 %v3770_v4  ;;  %823 = vmatprep.subr.mxu1 %v3771_v32  ;;  %v3792_v4 = vld [vmem:[#allocation26_spill] sm:$0xff] }
 0x146   :  { %753 = vmatpush1.msra.mxu0 %v3772_v41  ;;  %824 = vmatpush1.msra.mxu1 %v3773_v50  ;;  %v3791_v50 = vld [vmem:[#allocation24_spill] sm:$0xff] }
 0x147   :  { %754 = vmatprep.subr.mxu0 %v3774_v59  ;;  %825 = vmatprep.subr.mxu1 %v3775_v5 }
 0x148   :  { %755 = vmatpush1.msra.mxu0 %v3776_v57  ;;  %826 = vmatpush1.msra.mxu1 %v3777_v63  ;;  %v3787_v63 = vld [vmem:[#allocation3_spill] sm:$0xff] }
 0x149   :  { %756 = vmatprep.subr.mxu0 %v3778_v2  ;;  %827 = vmatprep.subr.mxu1 %v3779_v14  ;;  %v3788_v2 = vld [vmem:[#allocation4_spill] sm:$0xff] }
 0x14a   :  { %757 = vmatpush1.msra.mxu0 %v3780_v6  ;;  %828 = vmatpush1.msra.mxu1 %v3781_v62  ;;  %v3789_v6 = vld [vmem:[#allocation23_spill] sm:$0xff] }
 0x14b   :  { %758 = vmatprep.subr.mxu0 %v3782_v1  ;;  %829 = vmatprep.subr.mxu1 %v3783_v61  ;;  %v3790_v1 = vld [vmem:[#allocation25_spill] sm:$0xff] }
 0x14c   :  { %759 = vmatpush1.msra.mxu0 %v3784_v60  ;;  %792 = vmatprep.mubr.f32.mxu0 %v3785_v0 }
 0x14d   :  { %830 = vmatpush1.msra.mxu1 %v3786_v7  ;;  %863 = vmatprep.mubr.f32.mxu1 %v3785_v0 }
 0x14e   :  { %902 = vmatprep.subr.mxu0 %v3787_v63  ;;  %973 = vmatprep.subr.mxu1 %v3788_v2 }
 0x1ed   :  { %v620_v14 = vpop.f32.mrf.mxu0  ;;  %v691_v60 = vpop.f32.mrf.mxu1 }
 0x1ee   :  { %v696_v57 = vadd.f32 %v620_v14, %v3789_v6  ;;  %v698_v41 = vadd.f32 %v691_v60, %v3791_v50  ;;  %v3798_v60 = vld [vmem:[#allocation11_spill] sm:$0xff] }
 0x1ef   :  { %v622_v62 = vpop.f32.mrf.mxu0  ;;  %v693_v7 = vpop.f32.mrf.mxu1 }
 0x1f0   :  { %v1902_v5 = vmul.f32 -1.442695, %v696_v57  ;;  %v697_v59 = vadd.f32 %v622_v62, %v3790_v1  ;;  %v1904_v32 = vmul.f32 -1.442695, %v698_v41  ;;  %v699_v63 = vadd.f32 %v693_v7, %v3792_v4  ;;  %v3795_v41 = vld [vmem:[#allocation8_spill] sm:$0xff] }
 0x1f2   :  { %1996 = vpow2.f32 %v1902_v5  ;;  %v1903_v61 = vmul.f32 -1.442695, %v697_v59 }
 0x1f4   :  { %1998 = vpow2.f32 %v1903_v61 }
 0x1f5   :  { %2000 = vpow2.f32 %v1904_v32 }
 0x1ff   :  { %v1997_v0 = vpop.eup %1996 }
 0x200   :  { %v709_v58 = vadd.f32 1.0, %v1997_v0  ;;  %v3799_v0 = vld [vmem:[#allocation12_spill] sm:$0xff] }
 0x201   :  { %v1999_v2 = vpop.eup %1998 }
 0x202   :  { %2002 = vrcp.f32 %v709_v58  ;;  %v710_v14 = vadd.f32 1.0, %v1999_v2  ;;  %v2001_v57 = vpop.eup %2000  ;;  %v3794_v58 = vld [vmem:[#allocation7_spill] sm:$0xff]  ;;  %v3797_v2 = vld [vmem:[#allocation10_spill] sm:$0xff] }
 0x203   :  { %2004 = vtanh.f32 %v699_v63  ;;  %v711_v62 = vadd.f32 1.0, %v2001_v57  ;;  %v3796_v63 = vld [vmem:[#allocation9_spill] sm:$0xff]  ;;  %v3801_v57 = vld [vmem:[#allocation14_spill] sm:$0xff] }
 0x204   :  { %2006 = vrcp.f32 %v710_v14  ;;  %v3800_v14 = vld [vmem:[#allocation13_spill] sm:$0xff] }
 0x205   :  { %2008 = vrcp.f32 %v711_v62  ;;  %v3805_v62 = vld [vmem:[#allocation18_spill] sm:$0xff] }
 0x20f   :  { %v2003_v6 = vpop.eup %2002 }
 0x210   :  { %v2005_v5 = vpop.eup %2004 }
 0x211   :  { %v2007_v59 = vpop.eup %2006  ;;  %v720_v50 = vmul.f32 %v2005_v5, %v2003_v6  ;;  %v3802_v6 = vld [vmem:[#allocation15_spill] sm:$0xff]  ;;  %v3803_v5 = vld [vmem:[#allocation16_spill] sm:$0xff] }
 0x212   :  { %v719_v1 = vmul.f32 %v2007_v59, %v2783_v23  ;;  %v2009_v7 = vpop.eup %2008  ;;  %v3793_v23 = vld [vmem:[#allocation6_spill] sm:$0xff]  ;;  %v3804_v59 = vld [vmem:[#allocation17_spill] sm:$0xff] }
 0x214   :  { %v2857_v61 = vadd.f32 %v720_v50, %v719_v1  ;;  %v3806_v1 = vld [vmem:[#allocation19_spill] sm:$0xff]  ;;  %v3807_v50 = vld [vmem:[#allocation20_spill] sm:$0xff] }
 0x216   :  { %2010 = vtanh.f32 %v2857_v61 }
 0x223   :  { %v2011_v4 = vpop.eup %2010 }
 0x224   :  { %v723_v32 = vmul.f32 %v2011_v4, %v2009_v7  ;;  %v3808_v7 = vld [vmem:[#allocation21_spill] sm:$0xff]  ;;  %v3809_v4 = vmov 0.0  }
 0x226   :  { %793 = vmatmul.mubr.f32.vlgmr.msra.gmra.mxu0 %v723_v32  ;;  %864 = vmatmul.mubr.f32.vlgmr.msra.gmra.mxu1 %v723_v32  ;;  %v3810_v32 = vld [vmem:[#allocation22_spill] sm:$0xff] }
 0x227   :  { %903 = vmatpush1.msra.mxu0 %v2233_v8  ;;  %974 = vmatpush1.msra.mxu1 %v2238_v9 }
 0x228   :  { %904 = vmatprep.subr.mxu0 %v2245_v10  ;;  %975 = vmatprep.subr.mxu1 %v2250_v11 }
 0x229   :  { %905 = vmatpush1.msra.mxu0 %v2259_v12  ;;  %976 = vmatpush1.msra.mxu1 %v2264_v13 }
 0x22a   :  { %906 = vmatprep.subr.mxu0 %v2276_v15  ;;  %977 = vmatprep.subr.mxu1 %v2281_v16 }
 0x22b   :  { %907 = vmatpush1.msra.mxu0 %v2288_v17  ;;  %978 = vmatpush1.msra.mxu1 %v2293_v18 }
 0x22c   :  { %908 = vmatprep.subr.mxu0 %v2300_v19  ;;  %979 = vmatprep.subr.mxu1 %v2305_v20 }
 0x22d   :  { %909 = vmatpush1.msra.mxu0 %v2314_v21  ;;  %980 = vmatpush1.msra.mxu1 %v2319_v22 }
 0x22e   :  { %910 = vmatprep.subr.mxu0 %v2331_v24  ;;  %981 = vmatprep.subr.mxu1 %v2336_v25 }
 0x22f   :  { %911 = vmatpush1.msra.mxu0 %v2343_v26  ;;  %982 = vmatpush1.msra.mxu1 %v2348_v27 }
 0x230   :  { %912 = vmatprep.subr.mxu0 %v2355_v28  ;;  %983 = vmatprep.subr.mxu1 %v2360_v29 }
 0x231   :  { %913 = vmatpush1.msra.mxu0 %v2369_v30  ;;  %984 = vmatpush1.msra.mxu1 %v2374_v31 }
 0x232   :  { %914 = vmatprep.subr.mxu0 %v2386_v33  ;;  %985 = vmatprep.subr.mxu1 %v2391_v34 }
 0x233   :  { %915 = vmatpush1.msra.mxu0 %v2398_v35  ;;  %986 = vmatpush1.msra.mxu1 %v2403_v36 }
 0x234   :  { %916 = vmatprep.subr.mxu0 %v2410_v37  ;;  %987 = vmatprep.subr.mxu1 %v2415_v38 }
 0x235   :  { %917 = vmatpush1.msra.mxu0 %v2424_v39  ;;  %988 = vmatpush1.msra.mxu1 %v2429_v40 }
 0x236   :  { %918 = vmatprep.subr.mxu0 %v2441_v42  ;;  %989 = vmatprep.subr.mxu1 %v2446_v43 }
 0x237   :  { %919 = vmatpush1.msra.mxu0 %v2453_v44  ;;  %990 = vmatpush1.msra.mxu1 %v2458_v45 }
 0x238   :  { %920 = vmatprep.subr.mxu0 %v2465_v46  ;;  %991 = vmatprep.subr.mxu1 %v2470_v47 }
 0x239   :  { %921 = vmatpush1.msra.mxu0 %v2479_v48  ;;  %992 = vmatpush1.msra.mxu1 %v2484_v49 }
 0x23a   :  { %922 = vmatprep.subr.mxu0 %v2496_v51  ;;  %993 = vmatprep.subr.mxu1 %v2501_v52 }
 0x23b   :  { %923 = vmatpush1.msra.mxu0 %v2508_v53  ;;  %994 = vmatpush1.msra.mxu1 %v2513_v54 }
 0x23c   :  { %924 = vmatprep.subr.mxu0 %v2520_v55  ;;  %995 = vmatprep.subr.mxu1 %v2525_v56 }
 0x23d   :  { %925 = vmatpush1.msra.mxu0 %v3768_v3  ;;  %996 = vmatpush1.msra.mxu1 %v3793_v23 }
 0x23e   :  { %926 = vmatprep.subr.mxu0 %v3794_v58  ;;  %997 = vmatprep.subr.mxu1 %v3795_v41  ;;  %v3816_v58 = vld [vmem:[#allocation30_spill] sm:$0xff] }
 0x23f   :  { %927 = vmatpush1.msra.mxu0 %v3796_v63  ;;  %998 = vmatpush1.msra.mxu1 %v3797_v2  ;;  %v3815_v2 = vld [vmem:[#allocation28_spill] sm:$0xff] }
 0x240   :  { %928 = vmatprep.subr.mxu0 %v3798_v60  ;;  %999 = vmatprep.subr.mxu1 %v3799_v0 }
 0x241   :  { %929 = vmatpush1.msra.mxu0 %v3800_v14  ;;  %1000 = vmatpush1.msra.mxu1 %v3801_v57  ;;  %v3811_v57 = vld [vmem:[#allocation3_spill] sm:$0xff] }
 0x242   :  { %930 = vmatprep.subr.mxu0 %v3802_v6  ;;  %1001 = vmatprep.subr.mxu1 %v3803_v5  ;;  %v3812_v6 = vld [vmem:[#allocation4_spill] sm:$0xff] }
 0x243   :  { %931 = vmatpush1.msra.mxu0 %v3804_v59  ;;  %1002 = vmatpush1.msra.mxu1 %v3805_v62  ;;  %v3813_v59 = vld [vmem:[#allocation27_spill] sm:$0xff] }
 0x244   :  { %932 = vmatprep.subr.mxu0 %v3806_v1  ;;  %1003 = vmatprep.subr.mxu1 %v3807_v50  ;;  %v3814_v1 = vld [vmem:[#allocation29_spill] sm:$0xff] }
 0x245   :  { %933 = vmatpush1.msra.mxu0 %v3808_v7  ;;  %966 = vmatprep.mubr.f32.mxu0 %v3809_v4 }
 0x246   :  { %1004 = vmatpush1.msra.mxu1 %v3810_v32  ;;  %1037 = vmatprep.mubr.f32.mxu1 %v3809_v4 }
 0x247   :  { %1076 = vmatprep.subr.mxu0 %v3811_v57  ;;  %1147 = vmatprep.subr.mxu1 %v3812_v6 }
 0x2e6   :  { %v794_v5 = vpop.f32.mrf.mxu0  ;;  %v865_v7 = vpop.f32.mrf.mxu1 }
 0x2e7   :  { %v870_v14 = vadd.f32 %v794_v5, %v3813_v59  ;;  %v872_v63 = vadd.f32 %v865_v7, %v3815_v2 }
 0x2e8   :  { %v796_v62 = vpop.f32.mrf.mxu0  ;;  %v867_v32 = vpop.f32.mrf.mxu1 }
 0x2e9   :  { %v1905_v0 = vmul.f32 -1.442695, %v870_v14  ;;  %v871_v60 = vadd.f32 %v796_v62, %v3814_v1  ;;  %v1907_v41 = vmul.f32 -1.442695, %v872_v63  ;;  %v873_v57 = vadd.f32 %v867_v32, %v3816_v58 }
 0x2eb   :  { %2012 = vpow2.f32 %v1905_v0  ;;  %v1906_v50 = vmul.f32 -1.442695, %v871_v60 }
 0x2ed   :  { %2014 = vpow2.f32 %v1906_v50 }
 0x2ee   :  { %2016 = vpow2.f32 %v1907_v41 }
 0x2f8   :  { %v2013_v4 = vpop.eup %2012 }
 0x2f9   :  { %v883_v23 = vadd.f32 1.0, %v2013_v4 }
 0x2fa   :  { %v2015_v6 = vpop.eup %2014 }
 0x2fb   :  { %2018 = vrcp.f32 %v883_v23  ;;  %v884_v5 = vadd.f32 1.0, %v2015_v6  ;;  %v2017_v14 = vpop.eup %2016  ;;  %v3027_v6 = vld [vmem:[%s3632_s2 + $0x1f0] sm:$0xff] }
 0x2fc   :  { %2020 = vtanh.f32 %v873_v57  ;;  %v885_v62 = vadd.f32 1.0, %v2017_v14  ;;  %v3021_v57 = vld [vmem:[%s3632_s2 + $0x1e0] sm:$0xff]  ;;  %v3039_v14 = vld [vmem:[%s3632_s2 + $0x1d8] sm:$0xff] }
 0x2fd   :  { %2022 = vrcp.f32 %v884_v5  ;;  %v3033_v5 = vld [vmem:[%s3632_s2 + $0x1c8] sm:$0xff] }
 0x2fe   :  { %2024 = vrcp.f32 %v885_v62  ;;  %v3063_v62 = vld [vmem:[%s3632_s2 + $0x1b8] sm:$0xff] }
 0x308   :  { %v2019_v59 = vpop.eup %2018 }
 0x309   :  { %v2021_v0 = vpop.eup %2020 }
 0x30a   :  { %v2023_v60 = vpop.eup %2022  ;;  %v894_v2 = vmul.f32 %v2021_v0, %v2019_v59  ;;  %v3045_v59 = vld [vmem:[%s3632_s2 + $0x1c0] sm:$0xff]  ;;  %v3051_v0 = vld [vmem:[%s3632_s2 + $0x1d0] sm:$0xff] }
 0x30b   :  { %v893_v1 = vmul.f32 %v2023_v60, %v2857_v61  ;;  %v2025_v58 = vpop.eup %2024  ;;  %v3057_v60 = vld [vmem:[%s3632_s2 + $0x1a8] sm:$0xff] }
 0x30d   :  { %v2931_v50 = vadd.f32 %v894_v2, %v893_v1  ;;  %v3069_v1 = vld [vmem:[%s3632_s2 + $0x1a0] sm:$0xff]  ;;  %v3075_v2 = vld [vmem:[%s3632_s2 + $0x1b0] sm:$0xff] }
 0x30f   :  { %2026 = vtanh.f32 %v2931_v50 }
 0x31c   :  { %v2027_v63 = vpop.eup %2026 }
 0x31d   :  { %v897_v41 = vmul.f32 %v2027_v63, %v2025_v58  ;;  %v3087_v58 = vld [vmem:[%s3632_s2 + $0x198] sm:$0xff]  ;;  %v3093_v63 = vld [vmem:[%s3632_s2 + $0x180] sm:$0xff] }
 0x31f   :  { %967 = vmatmul.mubr.f32.vlgmr.msra.gmra.mxu0 %v897_v41  ;;  %1038 = vmatmul.mubr.f32.vlgmr.msra.gmra.mxu1 %v897_v41  ;;  %v3099_v41 = vld [vmem:[%s3632_s2 + $0x190] sm:$0xff] }
 0x320   :  { %1077 = vmatpush1.msra.mxu0 %v2233_v8  ;;  %1148 = vmatpush1.msra.mxu1 %v2238_v9  ;;  %v3817_v8 = vld [vmem:[#allocation6_spill] sm:$0xff]  ;;  %v3818_v9 = vld [vmem:[#allocation7_spill] sm:$0xff] }
 0x321   :  { %1078 = vmatprep.subr.mxu0 %v2245_v10  ;;  %1149 = vmatprep.subr.mxu1 %v2250_v11  ;;  %v3819_v10 = vld [vmem:[#allocation8_spill] sm:$0xff]  ;;  %v3820_v11 = vld [vmem:[#allocation9_spill] sm:$0xff] }
 0x322   :  { %1079 = vmatpush1.msra.mxu0 %v2259_v12  ;;  %1150 = vmatpush1.msra.mxu1 %v2264_v13  ;;  %v3821_v12 = vld [vmem:[#allocation10_spill] sm:$0xff]  ;;  %v3822_v13 = vld [vmem:[#allocation11_spill] sm:$0xff] }
 0x323   :  { %1080 = vmatprep.subr.mxu0 %v2276_v15  ;;  %1151 = vmatprep.subr.mxu1 %v2281_v16  ;;  %v3823_v15 = vld [vmem:[#allocation12_spill] sm:$0xff]  ;;  %v3824_v16 = vld [vmem:[#allocation13_spill] sm:$0xff] }
 0x324   :  { %1081 = vmatpush1.msra.mxu0 %v2288_v17  ;;  %1152 = vmatpush1.msra.mxu1 %v2293_v18  ;;  %v3825_v17 = vld [vmem:[#allocation14_spill] sm:$0xff]  ;;  %v3826_v18 = vld [vmem:[#allocation15_spill] sm:$0xff] }
 0x325   :  { %1082 = vmatprep.subr.mxu0 %v2300_v19  ;;  %1153 = vmatprep.subr.mxu1 %v2305_v20  ;;  %v3827_v19 = vld [vmem:[#allocation16_spill] sm:$0xff]  ;;  %v3828_v20 = vld [vmem:[#allocation17_spill] sm:$0xff] }
 0x326   :  { %1083 = vmatpush1.msra.mxu0 %v2314_v21  ;;  %1154 = vmatpush1.msra.mxu1 %v2319_v22  ;;  %v3829_v21 = vld [vmem:[#allocation18_spill] sm:$0xff]  ;;  %v3830_v22 = vld [vmem:[#allocation19_spill] sm:$0xff] }
 0x327   :  { %1084 = vmatprep.subr.mxu0 %v2331_v24  ;;  %1155 = vmatprep.subr.mxu1 %v2336_v25  ;;  %v3831_v24 = vld [vmem:[#allocation20_spill] sm:$0xff]  ;;  %v3832_v25 = vld [vmem:[#allocation21_spill] sm:$0xff] }
 0x328   :  { %1085 = vmatpush1.msra.mxu0 %v2343_v26  ;;  %1156 = vmatpush1.msra.mxu1 %v2348_v27  ;;  %v3833_v26 = vmov 0.0   ;;  %v3834_v27 = vld [vmem:[#allocation22_spill] sm:$0xff] }
 0x329   :  { %1086 = vmatprep.subr.mxu0 %v2355_v28  ;;  %1157 = vmatprep.subr.mxu1 %v2360_v29  ;;  %v3001_v28 = vld [vmem:[%s3632_s2 + $0x1e8] sm:$0xff]  ;;  %v3007_v29 = vld [vmem:[%s3632_s2 + $0x1f8] sm:$0xff] }
 0x32a   :  { %1087 = vmatpush1.msra.mxu0 %v2369_v30  ;;  %1158 = vmatpush1.msra.mxu1 %v2374_v31  ;;  %3835 = vst [vmem:[#allocation5_spill] sm:$0xff] %v3001_v28  ;;  %3836 = vst [vmem:[#allocation23_spill] sm:$0xff] %v3007_v29  ;;  %v3837_v31 = vld [vmem:[#allocation31_spill] sm:$0xff] }
 0x32b   :  { %1088 = vmatprep.subr.mxu0 %v2386_v33  ;;  %1159 = vmatprep.subr.mxu1 %v2391_v34 }
 0x32c   :  { %1089 = vmatpush1.msra.mxu0 %v2398_v35  ;;  %1160 = vmatpush1.msra.mxu1 %v2403_v36  ;;  %v3838_v36 = vld [vmem:[#allocation33_spill] sm:$0xff] }
 0x32d   :  { %1090 = vmatprep.subr.mxu0 %v2410_v37  ;;  %1161 = vmatprep.subr.mxu1 %v2415_v38 }
 0x32e   :  { %1091 = vmatpush1.msra.mxu0 %v2424_v39  ;;  %1162 = vmatpush1.msra.mxu1 %v2429_v40  ;;  %v3839_v40 = vld [vmem:[#allocation32_spill] sm:$0xff] }
 0x32f   :  { %1092 = vmatprep.subr.mxu0 %v2441_v42  ;;  %1163 = vmatprep.subr.mxu1 %v2446_v43 }
 0x330   :  { %1093 = vmatpush1.msra.mxu0 %v2453_v44  ;;  %1164 = vmatpush1.msra.mxu1 %v2458_v45 }
 0x331   :  { %1094 = vmatprep.subr.mxu0 %v2465_v46  ;;  %1165 = vmatprep.subr.mxu1 %v2470_v47  ;;  %v3840_v46 = vld [vmem:[#allocation34_spill] sm:$0xff] }
 0x332   :  { %1095 = vmatpush1.msra.mxu0 %v2479_v48  ;;  %1166 = vmatpush1.msra.mxu1 %v2484_v49 }
 0x333   :  { %1096 = vmatprep.subr.mxu0 %v2496_v51  ;;  %1167 = vmatprep.subr.mxu1 %v2501_v52 }
 0x334   :  { %1097 = vmatpush1.msra.mxu0 %v2508_v53  ;;  %1168 = vmatpush1.msra.mxu1 %v2513_v54 }
 0x335   :  { %1098 = vmatprep.subr.mxu0 %v2520_v55  ;;  %1169 = vmatprep.subr.mxu1 %v2525_v56 }
 0x336   :  { %1099 = vmatpush1.msra.mxu0 %v3768_v3  ;;  %1170 = vmatpush1.msra.mxu1 %v3817_v8  ;;  %v3105_v8 = vld [vmem:[%s3632_s2 + $0x168] sm:$0xff] }
 0x337   :  { %1100 = vmatprep.subr.mxu0 %v3818_v9  ;;  %1171 = vmatprep.subr.mxu1 %v3819_v10  ;;  %v3111_v9 = vld [vmem:[%s3632_s2 + $0x178] sm:$0xff]  ;;  %v3117_v10 = vld [vmem:[%s3632_s2 + $0x160] sm:$0xff] }
 0x338   :  { %1101 = vmatpush1.msra.mxu0 %v3820_v11  ;;  %1172 = vmatpush1.msra.mxu1 %v3821_v12  ;;  %v3123_v11 = vld [vmem:[%s3632_s2 + $0x170] sm:$0xff]  ;;  %v3129_v12 = vld [vmem:[%s3632_s2 + $0x148] sm:$0xff] }
 0x339   :  { %1102 = vmatprep.subr.mxu0 %v3822_v13  ;;  %1173 = vmatprep.subr.mxu1 %v3823_v15  ;;  %v3135_v13 = vld [vmem:[%s3632_s2 + $0x158] sm:$0xff]  ;;  %v3141_v15 = vld [vmem:[%s3632_s2 + $0x140] sm:$0xff] }
 0x33a   :  { %1103 = vmatpush1.msra.mxu0 %v3824_v16  ;;  %1174 = vmatpush1.msra.mxu1 %v3825_v17  ;;  %v3147_v16 = vld [vmem:[%s3632_s2 + $0x150] sm:$0xff]  ;;  %v3153_v17 = vld [vmem:[%s3632_s2 + $0x128] sm:$0xff] }
 0x33b   :  { %1104 = vmatprep.subr.mxu0 %v3826_v18  ;;  %1175 = vmatprep.subr.mxu1 %v3827_v19  ;;  %v3159_v18 = vld [vmem:[%s3632_s2 + $0x138] sm:$0xff]  ;;  %v3165_v19 = vld [vmem:[%s3632_s2 + $0x120] sm:$0xff] }
 0x33c   :  { %1105 = vmatpush1.msra.mxu0 %v3828_v20  ;;  %1176 = vmatpush1.msra.mxu1 %v3829_v21  ;;  %v3171_v20 = vld [vmem:[%s3632_s2 + $0x130] sm:$0xff]  ;;  %v3177_v21 = vld [vmem:[%s3632_s2 + $0x108] sm:$0xff] }
 0x33d   :  { %1106 = vmatprep.subr.mxu0 %v3830_v22  ;;  %1177 = vmatprep.subr.mxu1 %v3831_v24  ;;  %v3183_v22 = vld [vmem:[%s3632_s2 + $0x118] sm:$0xff]  ;;  %v3189_v24 = vld [vmem:[%s3632_s2 + $0x100] sm:$0xff] }
 0x33e   :  { %1107 = vmatpush1.msra.mxu0 %v3832_v25  ;;  %1140 = vmatprep.mubr.f32.mxu0 %v3833_v26  ;;  %v3195_v25 = vld [vmem:[%s3632_s2 + $0x110] sm:$0xff] }
 0x33f   :  { %1178 = vmatpush1.msra.mxu1 %v3834_v27  ;;  %1211 = vmatprep.mubr.f32.mxu1 %v3833_v26  ;;  %v3201_v27 = vld [vmem:[%s3632_s2 + $0xe8] sm:$0xff] }
 0x340   :  { %1250 = vmatprep.subr.mxu0 %v3001_v28  ;;  %1321 = vmatprep.subr.mxu1 %v3007_v29 }
 0x3df   :  { %v968_v30 = vpop.f32.mrf.mxu0  ;;  %v1039_v39 = vpop.f32.mrf.mxu1 }
 0x3e0   :  { %v1044_v33 = vadd.f32 %v968_v30, %v3837_v31  ;;  %v1046_v42 = vadd.f32 %v1039_v39, %v3839_v40  ;;  %v3207_v30 = vld [vmem:[%s3632_s2 + $0xf8] sm:$0xff]  ;;  %v3213_v31 = vld [vmem:[%s3632_s2 + $0xe0] sm:$0xff] }
 0x3e1   :  { %v970_v34 = vpop.f32.mrf.mxu0  ;;  %v1041_v43 = vpop.f32.mrf.mxu1  ;;  %v3255_v39 = vld [vmem:[%s3632_s2 + $0xb8] sm:$0xff]  ;;  %v3261_v40 = vld [vmem:[%s3632_s2 + $0xa0] sm:$0xff] }
 0x3e2   :  { %v1908_v35 = vmul.f32 -1.442695, %v1044_v33  ;;  %v1045_v37 = vadd.f32 %v970_v34, %v3838_v36  ;;  %v1910_v44 = vmul.f32 -1.442695, %v1046_v42  ;;  %v1047_v47 = vadd.f32 %v1041_v43, %v3840_v46  ;;  %v3219_v33 = vld [vmem:[%s3632_s2 + $0xf0] sm:$0xff]  ;;  %v3225_v34 = vld [vmem:[%s3632_s2 + $0xc8] sm:$0xff] }
 0x3e3   :  { %v3237_v36 = vld [vmem:[%s3632_s2 + $0xc0] sm:$0xff]  ;;  %v3267_v42 = vld [vmem:[%s3632_s2 + $0xb0] sm:$0xff]  ;;  %v3273_v43 = vld [vmem:[%s3632_s2 + $0x88] sm:$0xff] }
 0x3e4   :  { %2028 = vpow2.f32 %v1908_v35  ;;  %v1909_v38 = vmul.f32 -1.442695, %v1045_v37  ;;  %v3231_v35 = vld [vmem:[%s3632_s2 + $0xd8] sm:$0xff]  ;;  %v3243_v37 = vld [vmem:[%s3632_s2 + $0xd0] sm:$0xff] }
 0x3e5   :  { %v3291_v46 = vld [vmem:[%s3632_s2 + $0x90] sm:$0xff] }
 0x3e6   :  { %2030 = vpow2.f32 %v1909_v38  ;;  %v3249_v38 = vld [vmem:[%s3632_s2 + $0xa8] sm:$0xff]  ;;  %3841 = vst [vmem:[#allocation25_spill] sm:$0xff] %v3291_v46 }
 0x3e7   :  { %2032 = vpow2.f32 %v1910_v44  ;;  %v3279_v44 = vld [vmem:[%s3632_s2 + $0x98] sm:$0xff] }
 0x3f1   :  { %v2029_v45 = vpop.eup %2028 }
 0x3f2   :  { %v1057_v48 = vadd.f32 1.0, %v2029_v45  ;;  %v3285_v45 = vld [vmem:[%s3632_s2 + $0x80] sm:$0xff] }
 0x3f3   :  { %v2031_v49 = vpop.eup %2030 }
 0x3f4   :  { %2034 = vrcp.f32 %v1057_v48  ;;  %v1058_v51 = vadd.f32 1.0, %v2031_v49  ;;  %v2033_v52 = vpop.eup %2032  ;;  %v3303_v48 = vld [vmem:[%s3632_s2 + $0x78] sm:$0xff]  ;;  %v3309_v49 = vld [vmem:[%s3632_s2 + $0x60] sm:$0xff] }
 0x3f5   :  { %2036 = vtanh.f32 %v1047_v47  ;;  %v1059_v56 = vadd.f32 1.0, %v2033_v52  ;;  %v3297_v47 = vld [vmem:[%s3632_s2 + $0x68] sm:$0xff]  ;;  %3843 = vst [vmem:[#allocation26_spill] sm:$0xff] %v3303_v48  ;;  %3844 = vst [vmem:[#allocation3_spill] sm:$0xff] %v3309_v49 }
 0x3f6   :  { %2038 = vrcp.f32 %v1058_v51  ;;  %3842 = vst [vmem:[#allocation24_spill] sm:$0xff] %v3297_v47  ;;  %v3315_v51 = vld [vmem:[%s3632_s2 + $0x70] sm:$0xff]  ;;  %v3321_v52 = vld [vmem:[%s3632_s2 + $0x48] sm:$0xff] }
 0x3f7   :  { %2040 = vrcp.f32 %v1059_v56  ;;  %3845 = vst [vmem:[#allocation4_spill] sm:$0xff] %v3315_v51  ;;  %3846 = vst [vmem:[#allocation27_spill] sm:$0xff] %v3321_v52  ;;  %v3345_v56 = vld [vmem:[%s3632_s2 + $0x28] sm:$0xff] }
 0x3f8   :  { %3850 = vst [vmem:[#allocation6_spill] sm:$0xff] %v3345_v56 }
 0x401   :  { %v2035_v53 = vpop.eup %2034 }
 0x402   :  { %v2037_v54 = vpop.eup %2036 }
 0x403   :  { %v2039_v55 = vpop.eup %2038  ;;  %v1068_v61 = vmul.f32 %v2037_v54, %v2035_v53  ;;  %v3327_v53 = vld [vmem:[%s3632_s2 + $0x58] sm:$0xff]  ;;  %v3333_v54 = vld [vmem:[%s3632_s2 + $0x40] sm:$0xff] }
 0x404   :  { %v1067_v3 = vmul.f32 %v2039_v55, %v2931_v50  ;;  %v2041_v7 = vpop.eup %2040  ;;  %v3081_v50 = vld [vmem:[%s3632_s2 + $0x188] sm:$0xff]  ;;  %3847 = vst [vmem:[#allocation29_spill] sm:$0xff] %v3327_v53  ;;  %3848 = vst [vmem:[#allocation28_spill] sm:$0xff] %v3333_v54  ;;  %v3339_v55 = vld [vmem:[%s3632_s2 + $0x50] sm:$0xff] }
 0x405   :  { %3849 = vst [vmem:[#allocation30_spill] sm:$0xff] %v3339_v55 }
 0x406   :  { %v3015_v23 = vadd.f32 %v1068_v61, %v1067_v3  ;;  %v3351_v3 = vld [vmem:[%s3632_s2 + $0x38] sm:$0xff]  ;;  %v3357_v61 = vld [vmem:[%s3632_s2 + $0x20] sm:$0xff] }
 0x407   :  { %3851 = vst [vmem:[#allocation7_spill] sm:$0xff] %v3351_v3  ;;  %3852 = vst [vmem:[#allocation8_spill] sm:$0xff] %v3357_v61 }
 0x408   :  { %2042 = vtanh.f32 %v3015_v23 }
 0x415   :  { %v2043_v4 = vpop.eup %2042 }
 0x416   :  { %v1071_v32 = vmul.f32 %v2043_v4, %v2041_v7  ;;  %v3363_v7 = vld [vmem:[%s3632_s2 + $0x30] sm:$0xff]  ;;  %v3369_v4 = vld [vmem:[%s3632_s2 + $0x8] sm:$0xff] }
 0x417   :  { %3853 = vst [vmem:[#allocation9_spill] sm:$0xff] %v3363_v7  ;;  %3854 = vst [vmem:[#allocation10_spill] sm:$0xff] %v3369_v4 }
 0x418   :  { %1141 = vmatmul.mubr.f32.vlgmr.msra.gmra.mxu0 %v1071_v32  ;;  %1212 = vmatmul.mubr.f32.vlgmr.msra.gmra.mxu1 %v1071_v32  ;;  %v3375_v32 = vld [vmem:[%s3632_s2 + $0x18] sm:$0xff] }
 0x419   :  { %1251 = vmatpush1.msra.mxu0 %v3021_v57  ;;  %1322 = vmatpush1.msra.mxu1 %v3027_v6  ;;  %3855 = vst [vmem:[#allocation11_spill] sm:$0xff] %v3375_v32 }
 0x41a   :  { %1252 = vmatprep.subr.mxu0 %v3033_v5  ;;  %1323 = vmatprep.subr.mxu1 %v3039_v14 }
 0x41b   :  { %1253 = vmatpush1.msra.mxu0 %v3045_v59  ;;  %1324 = vmatpush1.msra.mxu1 %v3051_v0 }
 0x41c   :  { %1254 = vmatprep.subr.mxu0 %v3057_v60  ;;  %1325 = vmatprep.subr.mxu1 %v3063_v62 }
 0x41d   :  { %1255 = vmatpush1.msra.mxu0 %v3069_v1  ;;  %1326 = vmatpush1.msra.mxu1 %v3075_v2 }
 0x41e   :  { %1256 = vmatprep.subr.mxu0 %v3081_v50  ;;  %1327 = vmatprep.subr.mxu1 %v3087_v58 }
 0x41f   :  { %1257 = vmatpush1.msra.mxu0 %v3093_v63  ;;  %1328 = vmatpush1.msra.mxu1 %v3099_v41 }
 0x420   :  { %1258 = vmatprep.subr.mxu0 %v3105_v8  ;;  %1329 = vmatprep.subr.mxu1 %v3111_v9 }
 0x421   :  { %1259 = vmatpush1.msra.mxu0 %v3117_v10  ;;  %1330 = vmatpush1.msra.mxu1 %v3123_v11 }
 0x422   :  { %1260 = vmatprep.subr.mxu0 %v3129_v12  ;;  %1331 = vmatprep.subr.mxu1 %v3135_v13 }
 0x423   :  { %1261 = vmatpush1.msra.mxu0 %v3141_v15  ;;  %1332 = vmatpush1.msra.mxu1 %v3147_v16 }
 0x424   :  { %1262 = vmatprep.subr.mxu0 %v3153_v17  ;;  %1333 = vmatprep.subr.mxu1 %v3159_v18 }
 0x425   :  { %1263 = vmatpush1.msra.mxu0 %v3165_v19  ;;  %1334 = vmatpush1.msra.mxu1 %v3171_v20 }
 0x426   :  { %1264 = vmatprep.subr.mxu0 %v3177_v21  ;;  %1335 = vmatprep.subr.mxu1 %v3183_v22 }
 0x427   :  { %1265 = vmatpush1.msra.mxu0 %v3189_v24  ;;  %1336 = vmatpush1.msra.mxu1 %v3195_v25 }
 0x428   :  { %1266 = vmatprep.subr.mxu0 %v3201_v27  ;;  %1337 = vmatprep.subr.mxu1 %v3207_v30 }
 0x429   :  { %1267 = vmatpush1.msra.mxu0 %v3213_v31  ;;  %1338 = vmatpush1.msra.mxu1 %v3219_v33 }
 0x42a   :  { %1268 = vmatprep.subr.mxu0 %v3225_v34  ;;  %1339 = vmatprep.subr.mxu1 %v3231_v35 }
 0x42b   :  { %1269 = vmatpush1.msra.mxu0 %v3237_v36  ;;  %1340 = vmatpush1.msra.mxu1 %v3243_v37 }
 0x42c   :  { %1270 = vmatprep.subr.mxu0 %v3249_v38  ;;  %1341 = vmatprep.subr.mxu1 %v3255_v39 }
 0x42d   :  { %1271 = vmatpush1.msra.mxu0 %v3261_v40  ;;  %1342 = vmatpush1.msra.mxu1 %v3267_v42 }
 0x42e   :  { %1272 = vmatprep.subr.mxu0 %v3273_v43  ;;  %1343 = vmatprep.subr.mxu1 %v3279_v44 }
 0x42f   :  { %1273 = vmatpush1.msra.mxu0 %v3285_v45  ;;  %1344 = vmatpush1.msra.mxu1 %v3291_v46 }
 0x430   :  { %1274 = vmatprep.subr.mxu0 %v3297_v47  ;;  %1345 = vmatprep.subr.mxu1 %v3303_v48  ;;  %v3861_v47 = vld [vmem:[#allocation38_spill] sm:$0xff] }
 0x431   :  { %1275 = vmatpush1.msra.mxu0 %v3309_v49  ;;  %1346 = vmatpush1.msra.mxu1 %v3315_v51  ;;  %v3860_v51 = vld [vmem:[#allocation36_spill] sm:$0xff] }
 0x432   :  { %1276 = vmatprep.subr.mxu0 %v3321_v52  ;;  %1347 = vmatprep.subr.mxu1 %v3327_v53 }
 0x433   :  { %1277 = vmatpush1.msra.mxu0 %v3333_v54  ;;  %1348 = vmatpush1.msra.mxu1 %v3339_v55  ;;  %v3859_v55 = vld [vmem:[#allocation37_spill] sm:$0xff] }
 0x434   :  { %1278 = vmatprep.subr.mxu0 %v3345_v56  ;;  %1349 = vmatprep.subr.mxu1 %v3351_v3 }
 0x435   :  { %1279 = vmatpush1.msra.mxu0 %v3357_v61  ;;  %1350 = vmatpush1.msra.mxu1 %v3363_v7  ;;  %v3381_v61 = vld [vmem:[%s3632_s2] sm:$0xff] }
 0x436   :  { %1280 = vmatprep.subr.mxu0 %v3369_v4  ;;  %1351 = vmatprep.subr.mxu1 %v3375_v32  ;;  %3856 = vst [vmem:[#allocation12_spill] sm:$0xff] %v3381_v61  ;;  %v3388_v4 = vld [vmem:[%s3632_s2 + $0x10] sm:$0xff]  ;;  %v3858_v7 = vld [vmem:[#allocation35_spill] sm:$0xff] }
 0x437   :  { %1281 = vmatpush1.msra.mxu0 %v3381_v61  ;;  %1314 = vmatprep.mubr.f32.mxu0 %v3833_v26  ;;  %3857 = vst [vmem:[#allocation13_spill] sm:$0xff] %v3388_v4 }
 0x438   :  { %1352 = vmatpush1.msra.mxu1 %v3388_v4  ;;  %1385 = vmatprep.mubr.f32.mxu1 %v3833_v26 }
 0x439   :  { %1424 = vmatprep.subr.mxu0 %v3001_v28  ;;  %1495 = vmatprep.subr.mxu1 %v3007_v29 }
 0x4d8   :  { %v1142_v32 = vpop.f32.mrf.mxu0  ;;  %v1213_v52 = vpop.f32.mrf.mxu1 }
 0x4d9   :  { %v1218_v3 = vadd.f32 %v1142_v32, %v3858_v7  ;;  %v1220_v49 = vadd.f32 %v1213_v52, %v3860_v51  ;;  %v3868_v32 = vld [vmem:[#allocation29_spill] sm:$0xff] }
 0x4da   :  { %v1144_v56 = vpop.f32.mrf.mxu0  ;;  %v1215_v4 = vpop.f32.mrf.mxu1 }
 0x4db   :  { %v1911_v61 = vmul.f32 -1.442695, %v1218_v3  ;;  %v1219_v54 = vadd.f32 %v1144_v56, %v3859_v55  ;;  %v1913_v48 = vmul.f32 -1.442695, %v1220_v49  ;;  %v1221_v28 = vadd.f32 %v1215_v4, %v3861_v47  ;;  %v3866_v49 = vld [vmem:[#allocation4_spill] sm:$0xff]  ;;  %v3867_v4 = vld [vmem:[#allocation27_spill] sm:$0xff] }
 0x4dd   :  { %2044 = vpow2.f32 %v1911_v61  ;;  %v1912_v53 = vmul.f32 -1.442695, %v1219_v54 }
 0x4df   :  { %2046 = vpow2.f32 %v1912_v53 }
 0x4e0   :  { %2048 = vpow2.f32 %v1913_v48 }
 0x4ea   :  { %v2045_v26 = vpop.eup %2044 }
 0x4eb   :  { %v1231_v46 = vadd.f32 1.0, %v2045_v26 }
 0x4ec   :  { %v2047_v29 = vpop.eup %2046 }
 0x4ed   :  { %2050 = vrcp.f32 %v1231_v46  ;;  %v1232_v7 = vadd.f32 1.0, %v2047_v29  ;;  %v2049_v3 = vpop.eup %2048  ;;  %v3863_v29 = vld [vmem:[#allocation24_spill] sm:$0xff]  ;;  %v3865_v46 = vld [vmem:[#allocation3_spill] sm:$0xff] }
 0x4ee   :  { %2052 = vtanh.f32 %v1221_v28  ;;  %v1233_v53 = vadd.f32 1.0, %v2049_v3  ;;  %v3862_v28 = vld [vmem:[#allocation25_spill] sm:$0xff]  ;;  %v3870_v3 = vld [vmem:[#allocation30_spill] sm:$0xff] }
 0x4ef   :  { %2054 = vrcp.f32 %v1232_v7  ;;  %v3869_v7 = vld [vmem:[#allocation28_spill] sm:$0xff] }
 0x4f0   :  { %2056 = vrcp.f32 %v1233_v53  ;;  %v3874_v53 = vld [vmem:[#allocation9_spill] sm:$0xff] }
 0x4fa   :  { %v2051_v55 = vpop.eup %2050 }
 0x4fb   :  { %v2053_v56 = vpop.eup %2052 }
 0x4fc   :  { %v2055_v54 = vpop.eup %2054  ;;  %v1242_v51 = vmul.f32 %v2053_v56, %v2051_v55  ;;  %v3871_v55 = vld [vmem:[#allocation6_spill] sm:$0xff]  ;;  %v3872_v56 = vld [vmem:[#allocation7_spill] sm:$0xff] }
 0x4fd   :  { %v1241_v61 = vmul.f32 %v2055_v54, %v3015_v23  ;;  %v2057_v26 = vpop.eup %2056  ;;  %v3864_v23 = vld [vmem:[#allocation26_spill] sm:$0xff]  ;;  %v3873_v54 = vld [vmem:[#allocation8_spill] sm:$0xff] }
 0x4ff   :  { %v3399_v52 = vadd.f32 %v1242_v51, %v1241_v61  ;;  %v3875_v61 = vld [vmem:[#allocation10_spill] sm:$0xff]  ;;  %v3876_v51 = vld [vmem:[#allocation11_spill] sm:$0xff] }
 0x501   :  { %2058 = vtanh.f32 %v3399_v52 }
 0x50e   :  { %v2059_v47 = vpop.eup %2058 }
 0x50f   :  { %v1245_v48 = vmul.f32 %v2059_v47, %v2057_v26  ;;  %v3877_v26 = vld [vmem:[#allocation12_spill] sm:$0xff]  ;;  %v3878_v47 = vmov 0.0  }
 0x511   :  { %1315 = vmatmul.mubr.f32.vlgmr.msra.gmra.mxu0 %v1245_v48  ;;  %1386 = vmatmul.mubr.f32.vlgmr.msra.gmra.mxu1 %v1245_v48  ;;  %v3879_v48 = vld [vmem:[#allocation13_spill] sm:$0xff] }
 0x512   :  { %1425 = vmatpush1.msra.mxu0 %v3021_v57  ;;  %1496 = vmatpush1.msra.mxu1 %v3027_v6 }
 0x513   :  { %1426 = vmatprep.subr.mxu0 %v3033_v5  ;;  %1497 = vmatprep.subr.mxu1 %v3039_v14 }
 0x514   :  { %1427 = vmatpush1.msra.mxu0 %v3045_v59  ;;  %1498 = vmatpush1.msra.mxu1 %v3051_v0 }
 0x515   :  { %1428 = vmatprep.subr.mxu0 %v3057_v60  ;;  %1499 = vmatprep.subr.mxu1 %v3063_v62 }
 0x516   :  { %1429 = vmatpush1.msra.mxu0 %v3069_v1  ;;  %1500 = vmatpush1.msra.mxu1 %v3075_v2 }
 0x517   :  { %1430 = vmatprep.subr.mxu0 %v3081_v50  ;;  %1501 = vmatprep.subr.mxu1 %v3087_v58 }
 0x518   :  { %1431 = vmatpush1.msra.mxu0 %v3093_v63  ;;  %1502 = vmatpush1.msra.mxu1 %v3099_v41 }
 0x519   :  { %1432 = vmatprep.subr.mxu0 %v3105_v8  ;;  %1503 = vmatprep.subr.mxu1 %v3111_v9 }
 0x51a   :  { %1433 = vmatpush1.msra.mxu0 %v3117_v10  ;;  %1504 = vmatpush1.msra.mxu1 %v3123_v11 }
 0x51b   :  { %1434 = vmatprep.subr.mxu0 %v3129_v12  ;;  %1505 = vmatprep.subr.mxu1 %v3135_v13 }
 0x51c   :  { %1435 = vmatpush1.msra.mxu0 %v3141_v15  ;;  %1506 = vmatpush1.msra.mxu1 %v3147_v16 }
 0x51d   :  { %1436 = vmatprep.subr.mxu0 %v3153_v17  ;;  %1507 = vmatprep.subr.mxu1 %v3159_v18 }
 0x51e   :  { %1437 = vmatpush1.msra.mxu0 %v3165_v19  ;;  %1508 = vmatpush1.msra.mxu1 %v3171_v20 }
 0x51f   :  { %1438 = vmatprep.subr.mxu0 %v3177_v21  ;;  %1509 = vmatprep.subr.mxu1 %v3183_v22 }
 0x520   :  { %1439 = vmatpush1.msra.mxu0 %v3189_v24  ;;  %1510 = vmatpush1.msra.mxu1 %v3195_v25 }
 0x521   :  { %1440 = vmatprep.subr.mxu0 %v3201_v27  ;;  %1511 = vmatprep.subr.mxu1 %v3207_v30 }
 0x522   :  { %1441 = vmatpush1.msra.mxu0 %v3213_v31  ;;  %1512 = vmatpush1.msra.mxu1 %v3219_v33 }
 0x523   :  { %1442 = vmatprep.subr.mxu0 %v3225_v34  ;;  %1513 = vmatprep.subr.mxu1 %v3231_v35 }
 0x524   :  { %1443 = vmatpush1.msra.mxu0 %v3237_v36  ;;  %1514 = vmatpush1.msra.mxu1 %v3243_v37 }
 0x525   :  { %1444 = vmatprep.subr.mxu0 %v3249_v38  ;;  %1515 = vmatprep.subr.mxu1 %v3255_v39 }
 0x526   :  { %1445 = vmatpush1.msra.mxu0 %v3261_v40  ;;  %1516 = vmatpush1.msra.mxu1 %v3267_v42 }
 0x527   :  { %1446 = vmatprep.subr.mxu0 %v3273_v43  ;;  %1517 = vmatprep.subr.mxu1 %v3279_v44 }
 0x528   :  { %1447 = vmatpush1.msra.mxu0 %v3285_v45  ;;  %1518 = vmatpush1.msra.mxu1 %v3862_v28 }
 0x529   :  { %1448 = vmatprep.subr.mxu0 %v3863_v29  ;;  %1519 = vmatprep.subr.mxu1 %v3864_v23  ;;  %v3885_v29 = vld [vmem:[#allocation43_spill] sm:$0xff] }
 0x52a   :  { %1449 = vmatpush1.msra.mxu0 %v3865_v46  ;;  %1520 = vmatpush1.msra.mxu1 %v3866_v49  ;;  %v3884_v49 = vld [vmem:[#allocation41_spill] sm:$0xff] }
 0x52b   :  { %1450 = vmatprep.subr.mxu0 %v3867_v4  ;;  %1521 = vmatprep.subr.mxu1 %v3868_v32 }
 0x52c   :  { %1451 = vmatpush1.msra.mxu0 %v3869_v7  ;;  %1522 = vmatpush1.msra.mxu1 %v3870_v3  ;;  %v3880_v3 = vld [vmem:[#allocation5_spill] sm:$0xff] }
 0x52d   :  { %1452 = vmatprep.subr.mxu0 %v3871_v55  ;;  %1523 = vmatprep.subr.mxu1 %v3872_v56  ;;  %v3881_v55 = vld [vmem:[#allocation23_spill] sm:$0xff] }
 0x52e   :  { %1453 = vmatpush1.msra.mxu0 %v3873_v54  ;;  %1524 = vmatpush1.msra.mxu1 %v3874_v53  ;;  %v3882_v54 = vld [vmem:[#allocation39_spill] sm:$0xff] }
 0x52f   :  { %1454 = vmatprep.subr.mxu0 %v3875_v61  ;;  %1525 = vmatprep.subr.mxu1 %v3876_v51  ;;  %v3883_v61 = vld [vmem:[#allocation40_spill] sm:$0xff] }
 0x530   :  { %1455 = vmatpush1.msra.mxu0 %v3877_v26  ;;  %1488 = vmatprep.mubr.f32.mxu0 %v3878_v47 }
 0x531   :  { %1526 = vmatpush1.msra.mxu1 %v3879_v48  ;;  %1559 = vmatprep.mubr.f32.mxu1 %v3878_v47 }
 0x532   :  { %1598 = vmatprep.subr.mxu0 %v3880_v3  ;;  %1669 = vmatprep.subr.mxu1 %v3881_v55 }
 0x5d1   :  { %v1316_v56 = vpop.f32.mrf.mxu0  ;;  %v1387_v26 = vpop.f32.mrf.mxu1 }
 0x5d2   :  { %v1392_v7 = vadd.f32 %v1316_v56, %v3882_v54  ;;  %v1394_v46 = vadd.f32 %v1387_v26, %v3884_v49 }
 0x5d3   :  { %v1318_v53 = vpop.f32.mrf.mxu0  ;;  %v1389_v48 = vpop.f32.mrf.mxu1 }
 0x5d4   :  { %v1914_v32 = vmul.f32 -1.442695, %v1392_v7  ;;  %v1393_v4 = vadd.f32 %v1318_v53, %v3883_v61  ;;  %v1916_v23 = vmul.f32 -1.442695, %v1394_v46  ;;  %v1395_v3 = vadd.f32 %v1389_v48, %v3885_v29  ;;  %v1782_v48 = vld [vmem:[%s3633_s3 + $0x70] sm:$0xff] }
 0x5d6   :  { %2060 = vpow2.f32 %v1914_v32  ;;  %v1915_v51 = vmul.f32 -1.442695, %v1393_v4 }
 0x5d8   :  { %2062 = vpow2.f32 %v1915_v51 }
 0x5d9   :  { %2064 = vpow2.f32 %v1916_v23 }
 0x5e3   :  { %v2061_v47 = vpop.eup %2060 }
 0x5e4   :  { %v1405_v28 = vadd.f32 1.0, %v2061_v47  ;;  %v1783_v47 = vld [vmem:[%s3633_s3 + $0x78] sm:$0xff] }
 0x5e5   :  { %v2063_v55 = vpop.eup %2062 }
 0x5e6   :  { %2066 = vrcp.f32 %v1405_v28  ;;  %v1406_v56 = vadd.f32 1.0, %v2063_v55  ;;  %v2065_v7 = vpop.eup %2064  ;;  %v1780_v55 = vld [vmem:[%s3633_s3 + $0x60] sm:$0xff] }
 0x5e7   :  { %2068 = vtanh.f32 %v1395_v3  ;;  %v1407_v53 = vadd.f32 1.0, %v2065_v7  ;;  %v1781_v3 = vld [vmem:[%s3633_s3 + $0x68] sm:$0xff]  ;;  %v1778_v7 = vld [vmem:[%s3633_s3 + $0x50] sm:$0xff] }
 0x5e8   :  { %2070 = vrcp.f32 %v1406_v56  ;;  %v1779_v56 = vld [vmem:[%s3633_s3 + $0x58] sm:$0xff] }
 0x5e9   :  { %2072 = vrcp.f32 %v1407_v53  ;;  %v1774_v53 = vld [vmem:[%s3633_s3 + $0x30] sm:$0xff] }
 0x5f3   :  { %v2067_v54 = vpop.eup %2066 }
 0x5f4   :  { %v2069_v32 = vpop.eup %2068 }
 0x5f5   :  { %v2071_v4 = vpop.eup %2070  ;;  %v1416_v49 = vmul.f32 %v2069_v32, %v2067_v54  ;;  %v1777_v54 = vld [vmem:[%s3633_s3 + $0x48] sm:$0xff]  ;;  %v1776_v32 = vld [vmem:[%s3633_s3 + $0x40] sm:$0xff] }
 0x5f6   :  { %v1415_v61 = vmul.f32 %v2071_v4, %v3399_v52  ;;  %v2073_v29 = vpop.eup %2072  ;;  %v1775_v4 = vld [vmem:[%s3633_s3 + $0x38] sm:$0xff] }
 0x5f8   :  { %v3473_v51 = vadd.f32 %v1416_v49, %v1415_v61  ;;  %v1773_v61 = vld [vmem:[%s3633_s3 + $0x28] sm:$0xff]  ;;  %v1772_v49 = vld [vmem:[%s3633_s3 + $0x20] sm:$0xff] }
 0x5fa   :  { %2074 = vtanh.f32 %v3473_v51 }
 0x607   :  { %v2075_v46 = vpop.eup %2074 }
 0x608   :  { %v1419_v23 = vmul.f32 %v2075_v46, %v2073_v29  ;;  %v1770_v29 = vld [vmem:[%s3633_s3 + $0x10] sm:$0xff]  ;;  %v1769_v46 = vld [vmem:[%s3633_s3 + $0x8] sm:$0xff] }
 0x60a   :  { %1489 = vmatmul.mubr.f32.vlgmr.msra.gmra.mxu0 %v1419_v23  ;;  %1560 = vmatmul.mubr.f32.vlgmr.msra.gmra.mxu1 %v1419_v23  ;;  %v1768_v23 = vld [vmem:[%s3633_s3] sm:$0xff] }
 0x60b   :  { %1599 = vmatpush1.msra.mxu0 %v3021_v57  ;;  %1670 = vmatpush1.msra.mxu1 %v3027_v6  ;;  %v3886_v57 = vld [vmem:[#allocation25_spill] sm:$0xff]  ;;  %v3887_v6 = vld [vmem:[#allocation24_spill] sm:$0xff] }
 0x60c   :  { %1600 = vmatprep.subr.mxu0 %v3033_v5  ;;  %1671 = vmatprep.subr.mxu1 %v3039_v14  ;;  %v3888_v5 = vld [vmem:[#allocation26_spill] sm:$0xff]  ;;  %v3889_v14 = vld [vmem:[#allocation3_spill] sm:$0xff] }
 0x60d   :  { %1601 = vmatpush1.msra.mxu0 %v3045_v59  ;;  %1672 = vmatpush1.msra.mxu1 %v3051_v0  ;;  %v3890_v59 = vld [vmem:[#allocation4_spill] sm:$0xff]  ;;  %v3891_v0 = vld [vmem:[#allocation27_spill] sm:$0xff] }
 0x60e   :  { %1602 = vmatprep.subr.mxu0 %v3057_v60  ;;  %1673 = vmatprep.subr.mxu1 %v3063_v62  ;;  %v3892_v60 = vld [vmem:[#allocation29_spill] sm:$0xff]  ;;  %v3893_v62 = vld [vmem:[#allocation28_spill] sm:$0xff] }
 0x60f   :  { %1603 = vmatpush1.msra.mxu0 %v3069_v1  ;;  %1674 = vmatpush1.msra.mxu1 %v3075_v2  ;;  %v3894_v1 = vld [vmem:[#allocation30_spill] sm:$0xff] }
 0x610   :  { %1604 = vmatprep.subr.mxu0 %v3081_v50  ;;  %1675 = vmatprep.subr.mxu1 %v3087_v58  ;;  %v3895_v2 = vld [vmem:[#allocation6_spill] sm:$0xff]  ;;  %v3896_v50 = vld [vmem:[#allocation7_spill] sm:$0xff]  ;;  %v3897_v58 = vld [vmem:[#allocation8_spill] sm:$0xff] }
 0x611   :  { %1605 = vmatpush1.msra.mxu0 %v3093_v63  ;;  %1676 = vmatpush1.msra.mxu1 %v3099_v41  ;;  %v3898_v63 = vld [vmem:[#allocation9_spill] sm:$0xff]  ;;  %v3899_v41 = vld [vmem:[#allocation10_spill] sm:$0xff] }
 0x612   :  { %1606 = vmatprep.subr.mxu0 %v3105_v8  ;;  %1677 = vmatprep.subr.mxu1 %v3111_v9  ;;  %v3900_v8 = vld [vmem:[#allocation11_spill] sm:$0xff]  ;;  %v3901_v9 = vld [vmem:[#allocation12_spill] sm:$0xff] }
 0x613   :  { %1607 = vmatpush1.msra.mxu0 %v3117_v10  ;;  %1678 = vmatpush1.msra.mxu1 %v3123_v11  ;;  %v3902_v10 = vmov 0.0   ;;  %v3903_v11 = vld [vmem:[#allocation13_spill] sm:$0xff] }
 0x614   :  { %1608 = vmatprep.subr.mxu0 %v3129_v12  ;;  %1679 = vmatprep.subr.mxu1 %v3135_v13  ;;  %v3904_v13 = vld [vmem:[#allocation42_spill] sm:$0xff] }
 0x615   :  { %1609 = vmatpush1.msra.mxu0 %v3141_v15  ;;  %1680 = vmatpush1.msra.mxu1 %v3147_v16 }
 0x616   :  { %1610 = vmatprep.subr.mxu0 %v3153_v17  ;;  %1681 = vmatprep.subr.mxu1 %v3159_v18  ;;  %v3905_v18 = vld [vmem:[#allocation44_spill] sm:$0xff] }
 0x617   :  { %1611 = vmatpush1.msra.mxu0 %v3165_v19  ;;  %1682 = vmatpush1.msra.mxu1 %v3171_v20 }
 0x618   :  { %1612 = vmatprep.subr.mxu0 %v3177_v21  ;;  %1683 = vmatprep.subr.mxu1 %v3183_v22  ;;  %v3906_v22 = vld [vmem:[#allocation45_spill] sm:$0xff] }
 0x619   :  { %1613 = vmatpush1.msra.mxu0 %v3189_v24  ;;  %1684 = vmatpush1.msra.mxu1 %v3195_v25 }
 0x61a   :  { %1614 = vmatprep.subr.mxu0 %v3201_v27  ;;  %1685 = vmatprep.subr.mxu1 %v3207_v30 }
 0x61b   :  { %1615 = vmatpush1.msra.mxu0 %v3213_v31  ;;  %1686 = vmatpush1.msra.mxu1 %v3219_v33  ;;  %v3907_v31 = vld [vmem:[#allocation48_spill] sm:$0xff] }
 0x61c   :  { %1616 = vmatprep.subr.mxu0 %v3225_v34  ;;  %1687 = vmatprep.subr.mxu1 %v3231_v35 }
 0x61d   :  { %1617 = vmatpush1.msra.mxu0 %v3237_v36  ;;  %1688 = vmatpush1.msra.mxu1 %v3243_v37 }
 0x61e   :  { %1618 = vmatprep.subr.mxu0 %v3249_v38  ;;  %1689 = vmatprep.subr.mxu1 %v3255_v39 }
 0x61f   :  { %1619 = vmatpush1.msra.mxu0 %v3261_v40  ;;  %1690 = vmatpush1.msra.mxu1 %v3267_v42 }
 0x620   :  { %1620 = vmatprep.subr.mxu0 %v3273_v43  ;;  %1691 = vmatprep.subr.mxu1 %v3279_v44 }
 0x621   :  { %1621 = vmatpush1.msra.mxu0 %v3285_v45  ;;  %1692 = vmatpush1.msra.mxu1 %v3886_v57 }
 0x622   :  { %1622 = vmatprep.subr.mxu0 %v3887_v6  ;;  %1693 = vmatprep.subr.mxu1 %v3888_v5  ;;  %v3908_v6 = vld [vmem:[#allocation46_spill] sm:$0xff] }
 0x623   :  { %1623 = vmatpush1.msra.mxu0 %v3889_v14  ;;  %1694 = vmatpush1.msra.mxu1 %v3890_v59 }
 0x624   :  { %1624 = vmatprep.subr.mxu0 %v3891_v0  ;;  %1695 = vmatprep.subr.mxu1 %v3892_v60  ;;  %v3909_v0 = vld [vmem:[#allocation47_spill] sm:$0xff] }
 0x625   :  { %1625 = vmatpush1.msra.mxu0 %v3893_v62  ;;  %1696 = vmatpush1.msra.mxu1 %v3894_v1 }
 0x626   :  { %1626 = vmatprep.subr.mxu0 %v3895_v2  ;;  %1697 = vmatprep.subr.mxu1 %v3896_v50  ;;  %v3910_v2 = vld [vmem:[#allocation49_spill] sm:$0xff] }
 0x627   :  { %1627 = vmatpush1.msra.mxu0 %v3897_v58  ;;  %1698 = vmatpush1.msra.mxu1 %v3898_v63 }
 0x628   :  { %1628 = vmatprep.subr.mxu0 %v3899_v41  ;;  %1699 = vmatprep.subr.mxu1 %v3900_v8  ;;  %v3911_v8 = vld [vmem:[#allocation50_spill] sm:$0xff] }
 0x629   :  { %1629 = vmatpush1.msra.mxu0 %v3901_v9  ;;  %1662 = vmatprep.mubr.f32.mxu0 %v3902_v10 }
 0x62a   :  { %1700 = vmatpush1.msra.mxu1 %v3903_v11  ;;  %1733 = vmatprep.mubr.f32.mxu1 %v3902_v10 }
 0x62b   :  { %1943 = vmatprep.subr.mxu0 %v3902_v10 }
 0x6ca   :  { %v1490_v12 = vpop.f32.mrf.mxu0  ;;  %v1561_v21 = vpop.f32.mrf.mxu1 }
 0x6cb   :  { %v1566_v15 = vadd.f32 %v1490_v12, %v3904_v13  ;;  %v1568_v24 = vadd.f32 %v1561_v21, %v3906_v22 }
 0x6cc   :  { %v1492_v16 = vpop.f32.mrf.mxu0  ;;  %v1563_v25 = vpop.f32.mrf.mxu1 }
 0x6cd   :  { %v1917_v17 = vmul.f32 -1.442695, %v1566_v15  ;;  %v1567_v19 = vadd.f32 %v1492_v16, %v3905_v18  ;;  %v1919_v27 = vmul.f32 -1.442695, %v1568_v24  ;;  %v1569_v33 = vadd.f32 %v1563_v25, %v3907_v31 }
 0x6cf   :  { %2076 = vpow2.f32 %v1917_v17  ;;  %v1918_v20 = vmul.f32 -1.442695, %v1567_v19 }
 0x6d1   :  { %2078 = vpow2.f32 %v1918_v20 }
 0x6d2   :  { %2080 = vpow2.f32 %v1919_v27  ;;  %v1923_v27 = vld [vmem:[%s3633_s3 + $0x80] ss:$0 sm:$0xff] }
 0x6dc   :  { %v2077_v30 = vpop.eup %2076 }
 0x6dd   :  { %v1579_v34 = vadd.f32 1.0, %v2077_v30 }
 0x6de   :  { %v2079_v35 = vpop.eup %2078 }
 0x6df   :  { %2082 = vrcp.f32 %v1579_v34  ;;  %v1580_v36 = vadd.f32 1.0, %v2079_v35  ;;  %v2081_v37 = vpop.eup %2080  ;;  %v1924_v34 = vld [vmem:[%s3633_s3 + $0x88] ss:$0 sm:$0xff] }
 0x6e0   :  { %2084 = vtanh.f32 %v1569_v33  ;;  %v1581_v42 = vadd.f32 1.0, %v2081_v37 }
 0x6e1   :  { %2086 = vrcp.f32 %v1580_v36 }
 0x6e2   :  { %2088 = vrcp.f32 %v1581_v42 }
 0x6ec   :  { %v2083_v38 = vpop.eup %2082 }
 0x6ed   :  { %v2085_v39 = vpop.eup %2084 }
 0x6ee   :  { %v2087_v40 = vpop.eup %2086  ;;  %v1590_v44 = vmul.f32 %v2085_v39, %v2083_v38  ;;  %v1925_v38 = vld [vmem:[%s3633_s3 + $0x90] ss:$0 sm:$0xff] }
 0x6ef   :  { %v1589_v43 = vmul.f32 %v2087_v40, %v3473_v51  ;;  %v2089_v52 = vpop.eup %2088  ;;  %v1771_v51 = vld [vmem:[%s3633_s3 + $0x18] sm:$0xff] }
 0x6f1   :  { %v3546_v45 = vadd.f32 %v1590_v44, %v1589_v43 }
 0x6f3   :  { %2090 = vtanh.f32 %v3546_v45 }
 0x700   :  { %v2091_v28 = vpop.eup %2090 }
 0x701   :  { %v1593_v26 = vmul.f32 %v2091_v28, %v2089_v52 }
 0x703   :  { %1663 = vmatmul.mubr.f32.vlgmr.msra.gmra.mxu0 %v1593_v26  ;;  %1734 = vmatmul.mubr.f32.vlgmr.msra.gmra.mxu1 %v1593_v26 }
 0x704   :  { %1944 = vmatpush3.msra.mxu0 %v1783_v47  ;;  %1975 = vmatprep.mubr.msk.f32.mxu0 %vm2177_vm1, %v3902_v10 }
 0x705   :  { %1945 = vmatprep.subr.mxu0 %v3902_v10 }
 0x706   :  { %1946 = vmatpush3.msra.mxu0 %v1782_v48 }
 0x707   :  { %1947 = vmatprep.subr.mxu0 %v3902_v10 }
 0x708   :  { %1948 = vmatpush3.msra.mxu0 %v1781_v3 }
 0x709   :  { %1949 = vmatprep.subr.mxu0 %v3902_v10 }
 0x70a   :  { %1950 = vmatpush3.msra.mxu0 %v1780_v55 }
 0x70b   :  { %1951 = vmatprep.subr.mxu0 %v3902_v10 }
 0x70c   :  { %1952 = vmatpush3.msra.mxu0 %v1779_v56 }
 0x70d   :  { %1953 = vmatprep.subr.mxu0 %v3902_v10 }
 0x70e   :  { %1954 = vmatpush3.msra.mxu0 %v1778_v7 }
 0x70f   :  { %1955 = vmatprep.subr.mxu0 %v3902_v10 }
 0x710   :  { %1956 = vmatpush3.msra.mxu0 %v1777_v54 }
 0x711   :  { %1957 = vmatprep.subr.mxu0 %v3902_v10 }
 0x712   :  { %1958 = vmatpush3.msra.mxu0 %v1776_v32 }
 0x713   :  { %1959 = vmatprep.subr.mxu0 %v3902_v10 }
 0x714   :  { %1960 = vmatpush3.msra.mxu0 %v1775_v4 }
 0x715   :  { %1961 = vmatprep.subr.mxu0 %v3902_v10 }
 0x716   :  { %1962 = vmatpush3.msra.mxu0 %v1774_v53 }
 0x717   :  { %1963 = vmatprep.subr.mxu0 %v3902_v10 }
 0x718   :  { %1964 = vmatpush3.msra.mxu0 %v1773_v61 }
 0x719   :  { %1965 = vmatprep.subr.mxu0 %v3902_v10 }
 0x71a   :  { %1966 = vmatpush3.msra.mxu0 %v1772_v49 }
 0x71b   :  { %1967 = vmatprep.subr.mxu0 %v3902_v10 }
 0x71c   :  { %1968 = vmatpush3.msra.mxu0 %v1771_v51 }
 0x71d   :  { %1969 = vmatprep.subr.mxu0 %v3902_v10 }
 0x71e   :  { %1970 = vmatpush3.msra.mxu0 %v1770_v29 }
 0x71f   :  { %1971 = vmatprep.subr.mxu0 %v3902_v10 }
 0x720   :  { %1972 = vmatpush3.msra.mxu0 %v1769_v46 }
 0x721   :  { %1973 = vmatprep.subr.mxu0 %v3902_v10 }
 0x722   :  { %1974 = vmatpush3.msra.mxu0 %v1768_v23 }
 0x7c3   :  { %v1664_v57 = vpop.f32.mrf.mxu0  ;;  %v1735_v1 = vpop.f32.mrf.mxu1 }
 0x7c4   :  { %v1740_v5 = vadd.f32 %v1664_v57, %v3908_v6  ;;  %v1742_v50 = vadd.f32 %v1735_v1, %v3910_v2 }
 0x7c5   :  { %v1666_v14 = vpop.f32.mrf.mxu0  ;;  %v1737_v58 = vpop.f32.mrf.mxu1 }
 0x7c6   :  { %v1920_v59 = vmul.f32 -1.442695, %v1740_v5  ;;  %v1741_v60 = vadd.f32 %v1666_v14, %v3909_v0  ;;  %v1922_v63 = vmul.f32 -1.442695, %v1742_v50  ;;  %v1743_v9 = vadd.f32 %v1737_v58, %v3911_v8 }
 0x7c8   :  { %2092 = vpow2.f32 %v1920_v59  ;;  %v1921_v62 = vmul.f32 -1.442695, %v1741_v60 }
 0x7ca   :  { %2094 = vpow2.f32 %v1921_v62 }
 0x7cb   :  { %2096 = vpow2.f32 %v1922_v63 }
 0x7d5   :  { %v2093_v41 = vpop.eup %2092 }
 0x7d6   :  { %v1753_v10 = vadd.f32 1.0, %v2093_v41 }
 0x7d7   :  { %v2095_v11 = vpop.eup %2094 }
 0x7d8   :  { %2098 = vrcp.f32 %v1753_v10  ;;  %v1754_v12 = vadd.f32 1.0, %v2095_v11  ;;  %v2097_v13 = vpop.eup %2096 }
 0x7d9   :  { %2100 = vtanh.f32 %v1743_v9  ;;  %v1755_v18 = vadd.f32 1.0, %v2097_v13 }
 0x7da   :  { %2102 = vrcp.f32 %v1754_v12 }
 0x7db   :  { %2104 = vrcp.f32 %v1755_v18 }
 0x7e5   :  { %v2099_v15 = vpop.eup %2098 }
 0x7e6   :  { %v2101_v16 = vpop.eup %2100 }
 0x7e7   :  { %v2103_v17 = vpop.eup %2102  ;;  %v1764_v20 = vmul.f32 %v2101_v16, %v2099_v15 }
 0x7e8   :  { %v1763_v19 = vmul.f32 %v2103_v17, %v3546_v45  ;;  %v2105_v22 = vpop.eup %2104 }
 0x7ea   :  { %v1765_v21 = vadd.f32 %v1764_v20, %v1763_v19 }
 0x7ec   :  { %2106 = vtanh.f32 %v1765_v21 }
 0x7f9   :  { %v2107_v24 = vpop.eup %2106 }
 0x7fa   :  { %v1767_v25 = vmul.f32 %v2107_v24, %v2105_v22 }
 0x7fc   :  { %1976 = vmatmul.mubr.f32.vlgmr.msra.gmra.mxu0 %v1767_v25 }
 0x8bc   :  { %v1857_v30 = vpop.f32.mrf.mxu0 }
 0x8bd   :  { %v1858_v31 = vadd.f32 %v1923_v27, %v1857_v30 }
 0x8be   :  { %v1977_v33 = vpop.f32.mrf.mxu0 }
 0x8bf   :  { %2108 = vtanh.f32 %v1858_v31 }
 0x8cc   :  { %v2109_v35 = vpop.eup %2108 }
 0x8cd   :  { %v1866_v36 = vmul.f32 %v2109_v35, %v1924_v34 }
 0x8cf   :  { %v1868_v37 = vsel %vm1867_vm2, %v1866_v36, 0.0 }
 0x8d0   :  { %1869 = vadd.xlane.f32.xlu0 %v1868_v37 }
 0x959   :  { %v1870_v39 = vpop.xlane.xlu0 %1869 }
 0x95a   :  { %v1875_v40 = vadd.f32 %v1925_v38, %v1870_v39 }
 0x95c   :  { %2110 = vtanh.f32 %v1875_v40 }
 0x969   :  { %v2111_v42 = vpop.eup %2110 }
 0x96a   :  { %1878 = vst.msk [vmem:[%s3634_s4] sm:$0xff] %vm1877_vm3, %v2111_v42 }

</bundles_post_ra>
